<compile_context>
chip_gen: v5e
topology: v5e:2x2
jax: 0.10.0
libtpu: 0.0.40
codegen_flags: <defaults>
</compile_context>

<pallas_src>
import functools

import jax
import jax.numpy as jnp
from jax import lax
from jax.experimental import pallas as pl
from jax.experimental.pallas import tpu as pltpu


def _vmem_limit_bytes():
    """Scoped-VMEM request: ~5/8 of physical, capped at 64 MiB.

    v5e/v6e (128 MiB physical) -> 64 MiB; v7x (64 MiB per TC) -> 40 MiB.
    """
    try:
        cap = pltpu.get_tpu_info().vmem_capacity_bytes
    except Exception:
        cap = 64 * 1024 * 1024          # safe fallback for any generation
    return int(min(cap * 5 // 8, 64 * 1024 * 1024))


def _tile_vmem_bytes(t, *, H, W, Cin, Cout, d, out_bytes, with_residual):
    """Model of the actual per-step VMEM footprint for H-tile size `t`."""
    Hp, Wp = H + 2 * d, W + 2 * d
    img = 2 * Cin * Hp * Wp * 2                      # whole padded bf16 image, x2 pipeline bufs
    outb = 2 * Cout * t * W * out_bytes              # output block, double-buffered
    resb = (2 * Cout * t * W * 2) if with_residual else 0   # bf16 residual block
    acc = Cout * t * W * 4                           # f32 scratch accumulator
    band = Cin * (t + 2 * d) * Wp * 2                # loaded band value
    taps = 3 * Cin * t * W * 2                       # a few live tap slabs (headroom)
    wgt = 2 * (9 * Cout * Cin * 2 + 2 * Cout * 4)    # weights + folded scale/bias
    return img + outb + resb + acc + band + taps + wgt


def _pick_tile_h(N, H, W, Cin, Cout, d, *, out_bytes, with_residual, budget,
                 min_grid_steps=4):
    """Largest H-tile (divisor of H) that (a) keeps the flattened output lane-dense
    (tile_h*W % 128 == 0 unless it spans the whole image), (b) fits the VMEM budget,
    and (c) when possible leaves at least `min_grid_steps` grid steps so megacore
    (v7x) and DMA/compute pipelining have something to work with."""
    cands = [t for t in range(1, H + 1)
             if H % t == 0 and (t == H or (t * W) % 128 == 0)]
    feasible = [t for t in cands
                if _tile_vmem_bytes(t, H=H, W=W, Cin=Cin, Cout=Cout, d=d,
                                    out_bytes=out_bytes,
                                    with_residual=with_residual) <= budget]
    if not feasible:
        feasible = [min(cands)]          # best effort: smallest footprint candidate
    preferred = [t for t in feasible if N * (H // t) >= min_grid_steps]
    return max(preferred) if preferred else max(feasible)


def _rebnconv_kernel(x_ref, w_ref, scale_ref, bias_ref, *rest,
                     dirate, tile_h, out_w, add_residual):
    """One (batch, h-tile) grid step.

    x_ref:     (1, Cin, Hp, Wp)        bf16 zero-padded image (h-invariant block)
    w_ref:     (9, Cout, Cin)          bf16 per-tap conv weights (tap-major)
    scale_ref: (Cout, 1)               f32 folded eval-BN scale
    bias_ref:  (Cout, 1)               f32 folded eval-BN + conv bias
    res_ref:   (1, Cout, tile_h*out_w) bf16 optional fused residual (RSU skip)
    o_ref:     (1, Cout, tile_h*out_w) bf16/f32 lane-dense output tile
    acc_ref:   (Cout, tile_h*out_w)    f32 VMEM scratch accumulator
    """
    if add_residual:
        res_ref, o_ref, acc_ref = rest
    else:
        o_ref, acc_ref = rest

    d = dirate
    cin = x_ref.shape[1]
    L = tile_h * out_w
    h = pl.program_id(1)

    # Row band of the padded image feeding this output tile (tile_h + 2*d rows).
    row0 = pl.multiple_of(h * tile_h, tile_h)
    band = x_ref[0, :, pl.ds(row0, tile_h + 2 * d), :]          # (Cin, tile_h+2d, Wp)

    # 9 accumulating MXU matmuls (one per 3x3 tap) into the f32 scratch accumulator.
    # No (9*Cin, L) im2col slab is ever materialized.
    for ky in range(3):
        for kx in range(3):
            tap = band[:, ky * d:ky * d + tile_h, kx * d:kx * d + out_w]
            tap = tap.reshape(cin, L)                            # (Cin, tile_h*W) bf16
            part = jnp.dot(w_ref[3 * ky + kx], tap,
                           preferred_element_type=jnp.float32)   # (Cout, L) f32
            if ky == 0 and kx == 0:
                acc_ref[...] = part
            else:
                acc_ref[...] += part

    y = acc_ref[...] * scale_ref[...] + bias_ref[...]            # folded eval-BN + bias
    y = jnp.maximum(y, 0.0)                                      # ReLU
    if add_residual:
        y = y + res_ref[0].astype(jnp.float32)                   # fused RSU skip add
    o_ref[0] = y.astype(o_ref.dtype)                             # fused output cast


def rebnconv_forward(x, params, *, dirate=1, residual=None,
                     out_dtype=jnp.float32, tile_h=None):
    """REBNCONV forward (+ optional fused residual add).

    x:        (N, Cin, H, W)  f32 or bf16
    residual: (N, Cout, H, W) or None (added after the ReLU)
    returns   (N, Cout, H, W) out_dtype
    """
    w, b = params["w"], params["b"]
    gamma, beta = params["gamma"], params["beta"]
    rm, rv, eps = params["running_mean"], params["running_var"], params["eps"]

    N, Cin, H, W = x.shape
    Cout = w.shape[0]
    d = dirate
    out_bytes = jnp.dtype(out_dtype).itemsize
    add_residual = residual is not None

    vmem_limit = _vmem_limit_bytes()
    if tile_h is None:
        tile_h = _pick_tile_h(N, H, W, Cin, Cout, d,
                              out_bytes=out_bytes, with_residual=add_residual,
                              budget=vmem_limit - 4 * 1024 * 1024)
    assert H % tile_h == 0, (H, tile_h)
    assert tile_h == H or (tile_h * W) % 128 == 0, (tile_h, W)
    num_h = H // tile_h

    # Zero-pad spatially (padding == dilation). Intermediate activations arrive in bf16
    # already, so this is a cheap bf16->bf16 copy; only the first layer casts f32->bf16.
    x_pad = jnp.pad(x, ((0, 0), (0, 0), (d, d), (d, d))).astype(jnp.bfloat16)
    Hp, Wp = H + 2 * d, W + 2 * d

    # PyTorch OIHW -> (9, Cout, Cin), tap-major (ky, kx), bf16 for the MXU.
    w9 = jnp.transpose(w, (2, 3, 0, 1)).reshape(9, Cout, Cin).astype(jnp.bfloat16)

    # Fold eval-mode BatchNorm + conv bias into a per-channel affine (f32).
    inv_std = lax.rsqrt(rv + eps)
    scale = (gamma * inv_std).reshape(Cout, 1).astype(jnp.float32)
    bias = ((b - rm) * gamma * inv_std + beta).reshape(Cout, 1).astype(jnp.float32)

    kernel = functools.partial(_rebnconv_kernel, dirate=d, tile_h=tile_h,
                               out_w=W, add_residual=add_residual)

    in_specs = [
        # Whole padded image per n; block index is h-invariant -> fetched once per n.
        pl.BlockSpec((1, Cin, Hp, Wp), lambda n, h: (n, 0, 0, 0)),
        pl.BlockSpec((9, Cout, Cin), lambda n, h: (0, 0, 0)),
        pl.BlockSpec((Cout, 1), lambda n, h: (0, 0)),
        pl.BlockSpec((Cout, 1), lambda n, h: (0, 0)),
    ]
    inputs = [x_pad, w9, scale, bias]
    if add_residual:
        in_specs.append(pl.BlockSpec((1, Cout, tile_h * W), lambda n, h: (n, 0, h)))
        inputs.append(residual.reshape(N, Cout, H * W).astype(jnp.bfloat16))

    flops = 2 * N * H * W * 9 * Cin * Cout
    bytes_accessed = (x_pad.size * 2 + w9.size * 2 + (scale.size + bias.size) * 4
                      + N * Cout * H * W * out_bytes
                      + (N * Cout * H * W * 2 if add_residual else 0))

    out_flat = pl.pallas_call(
        kernel,
        out_shape=jax.ShapeDtypeStruct((N, Cout, H * W), out_dtype),
        grid_spec=pltpu.PrefetchScalarGridSpec(
            num_scalar_prefetch=0,
            grid=(N, num_h),
            in_specs=in_specs,
            out_specs=pl.BlockSpec((1, Cout, tile_h * W), lambda n, h: (n, 0, h)),
            scratch_shapes=[pltpu.VMEM((Cout, tile_h * W), jnp.float32)],
        ),
        compiler_params=pltpu.CompilerParams(
            dimension_semantics=("parallel", "parallel"),
            vmem_limit_bytes=vmem_limit),
        cost_estimate=pl.CostEstimate(flops=flops, transcendentals=0,
                                      bytes_accessed=bytes_accessed),
    )(*inputs)

    # Free reshape (contiguous trailing dims) back to NCHW.
    return out_flat.reshape(N, Cout, H, W)


def rsu_forward(x, params, *, tile_h=None):
    """RSU forward: conv_out(conv_mid(conv_in(x))) + conv_in(x).

    Intermediate activations and the residual travel in bf16; final output is f32.
    """
    hx = rebnconv_forward(x, params["conv_in"], dirate=1,
                          out_dtype=jnp.bfloat16, tile_h=tile_h)
    y = rebnconv_forward(hx, params["conv_mid"], dirate=1,
                         out_dtype=jnp.bfloat16, tile_h=tile_h)
    y = rebnconv_forward(y, params["conv_out"], dirate=1, residual=hx,
                         out_dtype=jnp.float32, tile_h=tile_h)
    return y


# ----------------------------- pure-JAX reference -----------------------------

def _rebnconv_reference(x, p, dirate=1):
    y = lax.conv_general_dilated(
        x, p["w"], window_strides=(1, 1),
        padding=((dirate, dirate), (dirate, dirate)),
        rhs_dilation=(dirate, dirate),
        dimension_numbers=("NCHW", "OIHW", "NCHW"),
        precision=lax.Precision.HIGHEST,
    ) + p["b"][None, :, None, None]
    inv = lax.rsqrt(p["running_var"] + p["eps"])
    y = (y - p["running_mean"][None, :, None, None]) \
        * (p["gamma"] * inv)[None, :, None, None] + p["beta"][None, :, None, None]
    return jnp.maximum(y, 0.0)


def _rsu_reference(x, params):
    hx = _rebnconv_reference(x, params["conv_in"])
    y = _rebnconv_reference(hx, params["conv_mid"])
    y = _rebnconv_reference(y, params["conv_out"])
    return y + hx


def _make_rebnconv_params(key, in_ch, out_ch):
    ks = jax.random.split(key, 6)
    return {
        "w": 0.1 * jax.random.normal(ks[0], (out_ch, in_ch, 3, 3), dtype=jnp.float32),
        "b": 0.05 * jax.random.normal(ks[1], (out_ch,), dtype=jnp.float32),
        "gamma": 1.0 + 0.1 * jax.random.normal(ks[2], (out_ch,), dtype=jnp.float32),
        "beta": 0.1 * jax.random.normal(ks[3], (out_ch,), dtype=jnp.float32),
        "running_mean": 0.1 * jax.random.normal(ks[4], (out_ch,), dtype=jnp.float32),
        "running_var": 1.0 + 0.1 * jax.random.uniform(ks[5], (out_ch,), dtype=jnp.float32),
        "eps": 1e-5,
    }


if __name__ == "__main__":
    key = jax.random.PRNGKey(0)
    k_x, k1, k2, k3 = jax.random.split(key, 4)

    N, in_ch, mid_ch, out_ch, H, W = 2, 4, 8, 8, 16, 16
    x = jax.random.normal(k_x, (N, in_ch, H, W), dtype=jnp.float32)

    params = {
        "conv_in": _make_rebnconv_params(k1, in_ch, out_ch),
        "conv_mid": _make_rebnconv_params(k2, out_ch, mid_ch),
        "conv_out": _make_rebnconv_params(k3, mid_ch, out_ch),
    }

    ref = jax.block_until_ready(_rsu_reference(x, params))

    # Auto-picked tile: prefers >=4 grid steps -> h-banded path (tile_h=8 here).
    out = jax.block_until_ready(rsu_forward(x, params))
    assert out.shape == (N, out_ch, H, W), out.shape
    assert jnp.allclose(out, ref, atol=5e-2, rtol=5e-2), \
        float(jnp.max(jnp.abs(out - ref)))

    # Explicitly exercise the single-tile (whole-image) grid path as well.
    out_full = jax.block_until_ready(rsu_forward(x, params, tile_h=H))
    assert jnp.allclose(out_full, ref, atol=5e-2, rtol=5e-2), \
        float(jnp.max(jnp.abs(out_full - ref)))

    print("KERNEL_OK")
</pallas_src>

<mosaic_0001>
module attributes {stable_mosaic.version = 11 : i64} {
  func.func @_rebnconv_kernel(%arg0: i32, %arg1: i32, %arg2: memref<1x4x18x18xbf16, #tpu.memory_space<vmem>>, %arg3: memref<9x8x4xbf16, #tpu.memory_space<vmem>>, %arg4: memref<8x1xf32, #tpu.memory_space<vmem>>, %arg5: memref<8x1xf32, #tpu.memory_space<vmem>>, %arg6: memref<1x8x128xbf16, #tpu.memory_space<vmem>>, %arg7: memref<8x128xf32, #tpu.memory_space<vmem>>) attributes {dimension_semantics = [#tpu.dimension_semantics<parallel>, #tpu.dimension_semantics<parallel>], iteration_bounds = array<i64: 2, 2>, scalar_prefetch = 0 : i64, scratch_operands = 1 : i64, tpu.core_type = #tpu.core_type<tc>, window_params = [{transform_indices = @transform_0, window_bounds = array<i64: 1, 4, 18, 18>}, {pipeline_mode = #tpu.pipeline_mode<synchronous>, transform_indices = @transform_1, window_bounds = array<i64: 9, 8, 4>}, {pipeline_mode = #tpu.pipeline_mode<synchronous>, transform_indices = @transform_2, window_bounds = array<i64: 8, 1>}, {pipeline_mode = #tpu.pipeline_mode<synchronous>, transform_indices = @transform_3, window_bounds = array<i64: 8, 1>}, {transform_indices = @transform_4, window_bounds = array<i64: 1, 8, 128>}]} {
    %c8_i32 = arith.constant 8 : i32
    %0 = arith.muli %arg1, %c8_i32 : i32
    %1 = tpu.assume_multiple %0, 8 : i32
    %c0 = arith.constant 0 : index
    %c0_0 = arith.constant 0 : index
    %2 = arith.index_cast %1 : i32 to index
    %c0_1 = arith.constant 0 : index
    %3 = vector.load %arg2[%c0, %c0_0, %2, %c0_1] : memref<1x4x18x18xbf16, #tpu.memory_space<vmem>>, vector<1x4x10x18xbf16>
    %4 = vector.shape_cast %3 : vector<1x4x10x18xbf16> to vector<4x10x18xbf16>
    %5 = vector.extract_strided_slice %4 {offsets = [0, 0, 0], sizes = [4, 8, 16], strides = [1, 1, 1]} : vector<4x10x18xbf16> to vector<4x8x16xbf16>
    %6 = vector.shape_cast %5 : vector<4x8x16xbf16> to vector<4x128xbf16>
    %c0_2 = arith.constant 0 : index
    %c0_3 = arith.constant 0 : index
    %c0_4 = arith.constant 0 : index
    %7 = vector.load %arg3[%c0_2, %c0_3, %c0_4] : memref<9x8x4xbf16, #tpu.memory_space<vmem>>, vector<1x8x4xbf16>
    %8 = vector.shape_cast %7 : vector<1x8x4xbf16> to vector<8x4xbf16>
    %cst = arith.constant dense<0.000000e+00> : vector<8x128xf32>
    %9 = tpu.matmul %8, %6, %cst {dimension_numbers = #tpu.dot_dimension_numbers<[1], [0], [0], [1], [0, 0, 1, 1], [], []>} : vector<8x4xbf16>, vector<4x128xbf16>, vector<8x128xf32> -> vector<8x128xf32>
    %c0_5 = arith.constant 0 : index
    %c0_6 = arith.constant 0 : index
    %10 = vector.load %arg7[%c0_5, %c0_6] : memref<8x128xf32, #tpu.memory_space<vmem>>, vector<8x128xf32>
    tpu.vector_store %arg7[%c0_5, %c0_6], %9 {strides = array<i32>} : memref<8x128xf32, #tpu.memory_space<vmem>>, vector<8x128xf32>,
    %11 = vector.extract_strided_slice %4 {offsets = [0, 0, 1], sizes = [4, 8, 16], strides = [1, 1, 1]} : vector<4x10x18xbf16> to vector<4x8x16xbf16>
    %12 = vector.shape_cast %11 : vector<4x8x16xbf16> to vector<4x128xbf16>
    %c1 = arith.constant 1 : index
    %c0_7 = arith.constant 0 : index
    %c0_8 = arith.constant 0 : index
    %13 = vector.load %arg3[%c1, %c0_7, %c0_8] : memref<9x8x4xbf16, #tpu.memory_space<vmem>>, vector<1x8x4xbf16>
    %14 = vector.shape_cast %13 : vector<1x8x4xbf16> to vector<8x4xbf16>
    %cst_9 = arith.constant dense<0.000000e+00> : vector<8x128xf32>
    %15 = tpu.matmul %14, %12, %cst_9 {dimension_numbers = #tpu.dot_dimension_numbers<[1], [0], [0], [1], [0, 0, 1, 1], [], []>} : vector<8x4xbf16>, vector<4x128xbf16>, vector<8x128xf32> -> vector<8x128xf32>
    %c0_10 = arith.constant 0 : index
    %c0_11 = arith.constant 0 : index
    %16 = vector.load %arg7[%c0_10, %c0_11] : memref<8x128xf32, #tpu.memory_space<vmem>>, vector<8x128xf32>
    %17 = arith.addf %16, %15 : vector<8x128xf32>
    %c0_12 = arith.constant 0 : index
    %c0_13 = arith.constant 0 : index
    %18 = vector.load %arg7[%c0_12, %c0_13] : memref<8x128xf32, #tpu.memory_space<vmem>>, vector<8x128xf32>
    tpu.vector_store %arg7[%c0_12, %c0_13], %17 {strides = array<i32>} : memref<8x128xf32, #tpu.memory_space<vmem>>, vector<8x128xf32>,
    %19 = vector.extract_strided_slice %4 {offsets = [0, 0, 2], sizes = [4, 8, 16], strides = [1, 1, 1]} : vector<4x10x18xbf16> to vector<4x8x16xbf16>
    %20 = vector.shape_cast %19 : vector<4x8x16xbf16> to vector<4x128xbf16>
    %c2 = arith.constant 2 : index
    %c0_14 = arith.constant 0 : index
    %c0_15 = arith.constant 0 : index
    %21 = vector.load %arg3[%c2, %c0_14, %c0_15] : memref<9x8x4xbf16, #tpu.memory_space<vmem>>, vector<1x8x4xbf16>
    %22 = vector.shape_cast %21 : vector<1x8x4xbf16> to vector<8x4xbf16>
    %cst_16 = arith.constant dense<0.000000e+00> : vector<8x128xf32>
    %23 = tpu.matmul %22, %20, %cst_16 {dimension_numbers = #tpu.dot_dimension_numbers<[1], [0], [0], [1], [0, 0, 1, 1], [], []>} : vector<8x4xbf16>, vector<4x128xbf16>, vector<8x128xf32> -> vector<8x128xf32>
    %c0_17 = arith.constant 0 : index
    %c0_18 = arith.constant 0 : index
    %24 = vector.load %arg7[%c0_17, %c0_18] : memref<8x128xf32, #tpu.memory_space<vmem>>, vector<8x128xf32>
    %25 = arith.addf %24, %23 : vector<8x128xf32>
    %c0_19 = arith.constant 0 : index
    %c0_20 = arith.constant 0 : index
    %26 = vector.load %arg7[%c0_19, %c0_20] : memref<8x128xf32, #tpu.memory_space<vmem>>, vector<8x128xf32>
    tpu.vector_store %arg7[%c0_19, %c0_20], %25 {strides = array<i32>} : memref<8x128xf32, #tpu.memory_space<vmem>>, vector<8x128xf32>,
    %27 = vector.extract_strided_slice %4 {offsets = [0, 1, 0], sizes = [4, 8, 16], strides = [1, 1, 1]} : vector<4x10x18xbf16> to vector<4x8x16xbf16>
    %28 = vector.shape_cast %27 : vector<4x8x16xbf16> to vector<4x128xbf16>
    %c3 = arith.constant 3 : index
    %c0_21 = arith.constant 0 : index
    %c0_22 = arith.constant 0 : index
    %29 = vector.load %arg3[%c3, %c0_21, %c0_22] : memref<9x8x4xbf16, #tpu.memory_space<vmem>>, vector<1x8x4xbf16>
    %30 = vector.shape_cast %29 : vector<1x8x4xbf16> to vector<8x4xbf16>
    %cst_23 = arith.constant dense<0.000000e+00> : vector<8x128xf32>
    %31 = tpu.matmul %30, %28, %cst_23 {dimension_numbers = #tpu.dot_dimension_numbers<[1], [0], [0], [1], [0, 0, 1, 1], [], []>} : vector<8x4xbf16>, vector<4x128xbf16>, vector<8x128xf32> -> vector<8x128xf32>
    %c0_24 = arith.constant 0 : index
    %c0_25 = arith.constant 0 : index
    %32 = vector.load %arg7[%c0_24, %c0_25] : memref<8x128xf32, #tpu.memory_space<vmem>>, vector<8x128xf32>
    %33 = arith.addf %32, %31 : vector<8x128xf32>
    %c0_26 = arith.constant 0 : index
    %c0_27 = arith.constant 0 : index
    %34 = vector.load %arg7[%c0_26, %c0_27] : memref<8x128xf32, #tpu.memory_space<vmem>>, vector<8x128xf32>
    tpu.vector_store %arg7[%c0_26, %c0_27], %33 {strides = array<i32>} : memref<8x128xf32, #tpu.memory_space<vmem>>, vector<8x128xf32>,
    %35 = vector.extract_strided_slice %4 {offsets = [0, 1, 1], sizes = [4, 8, 16], strides = [1, 1, 1]} : vector<4x10x18xbf16> to vector<4x8x16xbf16>
    %36 = vector.shape_cast %35 : vector<4x8x16xbf16> to vector<4x128xbf16>
    %c4 = arith.constant 4 : index
    %c0_28 = arith.constant 0 : index
    %c0_29 = arith.constant 0 : index
    %37 = vector.load %arg3[%c4, %c0_28, %c0_29] : memref<9x8x4xbf16, #tpu.memory_space<vmem>>, vector<1x8x4xbf16>
    %38 = vector.shape_cast %37 : vector<1x8x4xbf16> to vector<8x4xbf16>
    %cst_30 = arith.constant dense<0.000000e+00> : vector<8x128xf32>
    %39 = tpu.matmul %38, %36, %cst_30 {dimension_numbers = #tpu.dot_dimension_numbers<[1], [0], [0], [1], [0, 0, 1, 1], [], []>} : vector<8x4xbf16>, vector<4x128xbf16>, vector<8x128xf32> -> vector<8x128xf32>
    %c0_31 = arith.constant 0 : index
    %c0_32 = arith.constant 0 : index
    %40 = vector.load %arg7[%c0_31, %c0_32] : memref<8x128xf32, #tpu.memory_space<vmem>>, vector<8x128xf32>
    %41 = arith.addf %40, %39 : vector<8x128xf32>
    %c0_33 = arith.constant 0 : index
    %c0_34 = arith.constant 0 : index
    %42 = vector.load %arg7[%c0_33, %c0_34] : memref<8x128xf32, #tpu.memory_space<vmem>>, vector<8x128xf32>
    tpu.vector_store %arg7[%c0_33, %c0_34], %41 {strides = array<i32>} : memref<8x128xf32, #tpu.memory_space<vmem>>, vector<8x128xf32>,
    %43 = vector.extract_strided_slice %4 {offsets = [0, 1, 2], sizes = [4, 8, 16], strides = [1, 1, 1]} : vector<4x10x18xbf16> to vector<4x8x16xbf16>
    %44 = vector.shape_cast %43 : vector<4x8x16xbf16> to vector<4x128xbf16>
    %c5 = arith.constant 5 : index
    %c0_35 = arith.constant 0 : index
    %c0_36 = arith.constant 0 : index
    %45 = vector.load %arg3[%c5, %c0_35, %c0_36] : memref<9x8x4xbf16, #tpu.memory_space<vmem>>, vector<1x8x4xbf16>
    %46 = vector.shape_cast %45 : vector<1x8x4xbf16> to vector<8x4xbf16>
    %cst_37 = arith.constant dense<0.000000e+00> : vector<8x128xf32>
    %47 = tpu.matmul %46, %44, %cst_37 {dimension_numbers = #tpu.dot_dimension_numbers<[1], [0], [0], [1], [0, 0, 1, 1], [], []>} : vector<8x4xbf16>, vector<4x128xbf16>, vector<8x128xf32> -> vector<8x128xf32>
    %c0_38 = arith.constant 0 : index
    %c0_39 = arith.constant 0 : index
    %48 = vector.load %arg7[%c0_38, %c0_39] : memref<8x128xf32, #tpu.memory_space<vmem>>, vector<8x128xf32>
    %49 = arith.addf %48, %47 : vector<8x128xf32>
    %c0_40 = arith.constant 0 : index
    %c0_41 = arith.constant 0 : index
    %50 = vector.load %arg7[%c0_40, %c0_41] : memref<8x128xf32, #tpu.memory_space<vmem>>, vector<8x128xf32>
    tpu.vector_store %arg7[%c0_40, %c0_41], %49 {strides = array<i32>} : memref<8x128xf32, #tpu.memory_space<vmem>>, vector<8x128xf32>,
    %51 = vector.extract_strided_slice %4 {offsets = [0, 2, 0], sizes = [4, 8, 16], strides = [1, 1, 1]} : vector<4x10x18xbf16> to vector<4x8x16xbf16>
    %52 = vector.shape_cast %51 : vector<4x8x16xbf16> to vector<4x128xbf16>
    %c6 = arith.constant 6 : index
    %c0_42 = arith.constant 0 : index
    %c0_43 = arith.constant 0 : index
    %53 = vector.load %arg3[%c6, %c0_42, %c0_43] : memref<9x8x4xbf16, #tpu.memory_space<vmem>>, vector<1x8x4xbf16>
    %54 = vector.shape_cast %53 : vector<1x8x4xbf16> to vector<8x4xbf16>
    %cst_44 = arith.constant dense<0.000000e+00> : vector<8x128xf32>
    %55 = tpu.matmul %54, %52, %cst_44 {dimension_numbers = #tpu.dot_dimension_numbers<[1], [0], [0], [1], [0, 0, 1, 1], [], []>} : vector<8x4xbf16>, vector<4x128xbf16>, vector<8x128xf32> -> vector<8x128xf32>
    %c0_45 = arith.constant 0 : index
    %c0_46 = arith.constant 0 : index
    %56 = vector.load %arg7[%c0_45, %c0_46] : memref<8x128xf32, #tpu.memory_space<vmem>>, vector<8x128xf32>
    %57 = arith.addf %56, %55 : vector<8x128xf32>
    %c0_47 = arith.constant 0 : index
    %c0_48 = arith.constant 0 : index
    %58 = vector.load %arg7[%c0_47, %c0_48] : memref<8x128xf32, #tpu.memory_space<vmem>>, vector<8x128xf32>
    tpu.vector_store %arg7[%c0_47, %c0_48], %57 {strides = array<i32>} : memref<8x128xf32, #tpu.memory_space<vmem>>, vector<8x128xf32>,
    %59 = vector.extract_strided_slice %4 {offsets = [0, 2, 1], sizes = [4, 8, 16], strides = [1, 1, 1]} : vector<4x10x18xbf16> to vector<4x8x16xbf16>
    %60 = vector.shape_cast %59 : vector<4x8x16xbf16> to vector<4x128xbf16>
    %c7 = arith.constant 7 : index
    %c0_49 = arith.constant 0 : index
    %c0_50 = arith.constant 0 : index
    %61 = vector.load %arg3[%c7, %c0_49, %c0_50] : memref<9x8x4xbf16, #tpu.memory_space<vmem>>, vector<1x8x4xbf16>
    %62 = vector.shape_cast %61 : vector<1x8x4xbf16> to vector<8x4xbf16>
    %cst_51 = arith.constant dense<0.000000e+00> : vector<8x128xf32>
    %63 = tpu.matmul %62, %60, %cst_51 {dimension_numbers = #tpu.dot_dimension_numbers<[1], [0], [0], [1], [0, 0, 1, 1], [], []>} : vector<8x4xbf16>, vector<4x128xbf16>, vector<8x128xf32> -> vector<8x128xf32>
    %c0_52 = arith.constant 0 : index
    %c0_53 = arith.constant 0 : index
    %64 = vector.load %arg7[%c0_52, %c0_53] : memref<8x128xf32, #tpu.memory_space<vmem>>, vector<8x128xf32>
    %65 = arith.addf %64, %63 : vector<8x128xf32>
    %c0_54 = arith.constant 0 : index
    %c0_55 = arith.constant 0 : index
    %66 = vector.load %arg7[%c0_54, %c0_55] : memref<8x128xf32, #tpu.memory_space<vmem>>, vector<8x128xf32>
    tpu.vector_store %arg7[%c0_54, %c0_55], %65 {strides = array<i32>} : memref<8x128xf32, #tpu.memory_space<vmem>>, vector<8x128xf32>,
    %67 = vector.extract_strided_slice %4 {offsets = [0, 2, 2], sizes = [4, 8, 16], strides = [1, 1, 1]} : vector<4x10x18xbf16> to vector<4x8x16xbf16>
    %68 = vector.shape_cast %67 : vector<4x8x16xbf16> to vector<4x128xbf16>
    %c8 = arith.constant 8 : index
    %c0_56 = arith.constant 0 : index
    %c0_57 = arith.constant 0 : index
    %69 = vector.load %arg3[%c8, %c0_56, %c0_57] : memref<9x8x4xbf16, #tpu.memory_space<vmem>>, vector<1x8x4xbf16>
    %70 = vector.shape_cast %69 : vector<1x8x4xbf16> to vector<8x4xbf16>
    %cst_58 = arith.constant dense<0.000000e+00> : vector<8x128xf32>
    %71 = tpu.matmul %70, %68, %cst_58 {dimension_numbers = #tpu.dot_dimension_numbers<[1], [0], [0], [1], [0, 0, 1, 1], [], []>} : vector<8x4xbf16>, vector<4x128xbf16>, vector<8x128xf32> -> vector<8x128xf32>
    %c0_59 = arith.constant 0 : index
    %c0_60 = arith.constant 0 : index
    %72 = vector.load %arg7[%c0_59, %c0_60] : memref<8x128xf32, #tpu.memory_space<vmem>>, vector<8x128xf32>
    %73 = arith.addf %72, %71 : vector<8x128xf32>
    %c0_61 = arith.constant 0 : index
    %c0_62 = arith.constant 0 : index
    %74 = vector.load %arg7[%c0_61, %c0_62] : memref<8x128xf32, #tpu.memory_space<vmem>>, vector<8x128xf32>
    tpu.vector_store %arg7[%c0_61, %c0_62], %73 {strides = array<i32>} : memref<8x128xf32, #tpu.memory_space<vmem>>, vector<8x128xf32>,
    %c0_63 = arith.constant 0 : index
    %c0_64 = arith.constant 0 : index
    %75 = vector.load %arg7[%c0_63, %c0_64] : memref<8x128xf32, #tpu.memory_space<vmem>>, vector<8x128xf32>
    %c0_65 = arith.constant 0 : index
    %c0_66 = arith.constant 0 : index
    %76 = vector.load %arg4[%c0_65, %c0_66] : memref<8x1xf32, #tpu.memory_space<vmem>>, vector<8x1xf32>
    %77 = vector.broadcast %76 : vector<8x1xf32> to vector<8x128xf32>
    %78 = arith.mulf %75, %77 : vector<8x128xf32>
    %c0_67 = arith.constant 0 : index
    %c0_68 = arith.constant 0 : index
    %79 = vector.load %arg5[%c0_67, %c0_68] : memref<8x1xf32, #tpu.memory_space<vmem>>, vector<8x1xf32>
    %80 = vector.broadcast %79 : vector<8x1xf32> to vector<8x128xf32>
    %81 = arith.addf %78, %80 : vector<8x128xf32>
    %cst_69 = arith.constant 0.000000e+00 : f32
    %82 = vector.broadcast %cst_69 : f32 to vector<8x128xf32>
    %83 = arith.maximumf %81, %82 : vector<8x128xf32>
    %84 = arith.truncf %83 : vector<8x128xf32> to vector<8x128xbf16>
    %c0_70 = arith.constant 0 : index
    %c0_71 = arith.constant 0 : index
    %c0_72 = arith.constant 0 : index
    %85 = vector.load %arg6[%c0_70, %c0_71, %c0_72] : memref<1x8x128xbf16, #tpu.memory_space<vmem>>, vector<1x8x128xbf16>
    %86 = vector.shape_cast %85 : vector<1x8x128xbf16> to vector<8x128xbf16>
    %87 = vector.shape_cast %84 : vector<8x128xbf16> to vector<1x8x128xbf16>
    tpu.vector_store %arg6[%c0_70, %c0_71, %c0_72], %87 {strides = array<i32>} : memref<1x8x128xbf16, #tpu.memory_space<vmem>>, vector<1x8x128xbf16>,
    return
  }
  func.func @transform_0(%arg0: i32, %arg1: i32) -> (i32, i32, i32, i32) {
    %c0_i32 = arith.constant 0 : i32
    %c0_i32_0 = arith.constant 0 : i32
    %c0_i32_1 = arith.constant 0 : i32
    %c0_i32_2 = arith.constant 0 : i32
    return %arg0, %c0_i32, %c0_i32_0, %c0_i32_1 : i32, i32, i32, i32
  }
  func.func @transform_1(%arg0: i32, %arg1: i32) -> (i32, i32, i32) {
    %c0_i32 = arith.constant 0 : i32
    %c0_i32_0 = arith.constant 0 : i32
    %c0_i32_1 = arith.constant 0 : i32
    %c0_i32_2 = arith.constant 0 : i32
    return %c0_i32, %c0_i32_0, %c0_i32_1 : i32, i32, i32
  }
  func.func @transform_2(%arg0: i32, %arg1: i32) -> (i32, i32) {
    %c0_i32 = arith.constant 0 : i32
    %c0_i32_0 = arith.constant 0 : i32
    %c0_i32_1 = arith.constant 0 : i32
    return %c0_i32, %c0_i32_0 : i32, i32
  }
  func.func @transform_3(%arg0: i32, %arg1: i32) -> (i32, i32) {
    %c0_i32 = arith.constant 0 : i32
    %c0_i32_0 = arith.constant 0 : i32
    %c0_i32_1 = arith.constant 0 : i32
    return %c0_i32, %c0_i32_0 : i32, i32
  }
  func.func @transform_4(%arg0: i32, %arg1: i32) -> (i32, i32, i32) {
    %c0_i32 = arith.constant 0 : i32
    %c0_i32_0 = arith.constant 0 : i32
    return %arg0, %c0_i32, %arg1 : i32, i32, i32
  }
}

</mosaic_0001>

<bundles_post_ra>
// kernel: tpu_custom_call.1
= control target key start
LH: loop header
LB: loop body
LE: loop exit
PB: predicated region body
PF: predicated region fallthrough
CT: control target
= control target key end

     0   :  { %9 = vsyncpa [#allocation4], 0  ;;  %s2726_s0 = inlined_call_operand.vmem [shape: bf16[2,4,18,18], index: 0, kind: input, shape index: {}]   ;;  %s2727_s1 = inlined_call_operand.vmem [shape: bf16[9,8,4], index: 1, kind: input, shape index: {}]   ;;  %s2728_s2 = inlined_call_operand.vmem [shape: f32[8,1], index: 2, kind: input, shape index: {}]   ;;  %s2729_s3 = inlined_call_operand.vmem [shape: f32[8,1], index: 3, kind: input, shape index: {}]   ;;  %s2730_s4 = inlined_call_operand.hbm [shape: bf16[2,8,256], index: 4, kind: output, shape index: {}]  }
   0x1   :  { %11 = vsyncpa [#allocation4 + $0x1], 0  ;;  %s1954_s15 = smov 0   ;;  %s1956_s16 = smov 0  }
   0x2   :  { %s1958_s17 = smov 0   ;;  %s1960_s18 = smov 0  }
   0x3   :  { %s1962_s19 = smov 0   ;;  %s1964_s20 = smov 0  }
   0x4   :  { %s1966_s21 = smov 0   ;;  %s1968_s22 = smov 0  }
   0x5 LB: > { %s1700_s23 = sadd.s32 4294967295, %s1915_s22   ;;  %s1701_s24 = sadd.s32 4294967294, %s1915_s22   ;;  %s1915_s22 = sphi %s1968_s22, %s17_s22   ;;  %s1911_s21 = sphi %s1966_s21, %s2743_s21   ;;  %s1907_s20 = sphi %s1964_s20, %s2742_s20   ;;  %s1903_s19 = sphi %s1962_s19, %s2741_s19   ;;  %s1899_s18 = sphi %s1960_s18, %s2740_s18   ;;  %s1895_s17 = sphi %s1958_s17, %s2739_s17   ;;  %s1891_s16 = sphi %s1956_s16, %s2738_s16   ;;  %s1887_s15 = sphi %s1954_s15, %s2737_s15  }
   0x6   : > { %s26_s25 = sadd.s32 1, %s1907_s20  ;;  %s29_s26 = sadd.s32 1, %s1911_s21 }
   0x7   : > { %p27_p0 = scmp.ge.s32.totalorder %s26_s25, 2  ;;  %p137_p1 = scmp.ne.s32.totalorder %s1895_s17, %s1891_s16 }
   0x8   : > { %p138_p2 = scmp.eq.s32.totalorder %s1700_s23, 3  ;;  %p143_p5 = scmp.ne.s32.totalorder %s1891_s16, %s1887_s15 }
   0x9   : > { %s2745_s25 = smov (%p27_p0, %s26_s25), 0  ;;  %s2747_s26 = smov (!%p27_p0, %s29_s26), %s1911_s21 }
   0xa   : > { %s123_s27 = ssub.s32 %s1907_s20, %s2745_s25  ;;  %p2005_p3 = por %p138_p2, %p137_p1 }
   0xb   : > { %p31_p4 = scmp.ge.s32.totalorder %s2747_s26, 2  ;;  %p144_p6 = scmp.eq.s32.totalorder %s1701_s24, 3 }
   0xc   : > { %p1704_p7 = scmp.ge.s32.totalorder %s1915_s22, 1  ;;  %p179_p9 = scmp.lt.s32.totalorder %s1915_s22, 5 }
   0xd   : > { %s2749_s26 = smov (%p31_p4, %s2747_s26), 0  ;;  %p2014_p8 = por %p144_p6, %p143_p5 }
   0xe   : > { %s122_s30 = ssub.s32 %s1911_s21, %s2749_s26  ;;  %s127_s5 = sadd.s32 1, %s1895_s17 }
   0xf   : > { %s124_s6 = sor.u32 %s123_s27, %s122_s30  ;;  %p180_p10 = pnand %p1704_p7, %p179_p9 }
  0x10   : > { %p125_p11 = scmp.eq.s32.totalorder %s124_s6, 0  ;;  %p205_p12 = scmp.lt.s32.totalorder (!%p180_p10), %s1903_s19, 1 }
  0x11   : > { %183 = sbr.rel (%p180_p10) target bundleno = 559 (0x22f), region = 36  ;;  %s1707_s8 = sshll.u32 (!%p180_p10), %s1899_s18, 3 }
  0x12   : > { %s2023_s7 = scalar_select %p125_p11, %s1895_s17, %s127_s5  }
  0x13   : > { %s212_s9 = sshra.s32 (!%p180_p10), %s1707_s8, 3  ;;  %s1918_s27 = smov (!%p180_p10), 127  }
  0x14   : > { %s1708_s12 = sshll.u32 (!%p180_p10), %s212_s9, 2  ;;  %s1919_s30 = smov (!%p180_p10), 126  }
  0x15   : > { %s1921_s5 = smov (!%p180_p10), 16   ;;  %s1922_s6 = smov (!%p180_p10), 32  }
  0x16   : > { %s206_s10 = scalar_select %p205_p12, %s1903_s19, 1  ;;  %v1917_v0 = vmov 1983009808   ;;  %v1920_v12 = vmov 1934713408   ;;  %vm247_vm0 = vcmask 1047556  }
  0x17   : > { %v238_v1 = vunpack.c.l.s4 %v1917_v0  ;;  %v252_v13 = vunpack.c.l.s4 %v1920_v12  ;;  %vm1144_vm1 = vcmask 1042432   ;;  %vm1145_vm2 = vcmask 1046532   ;;  %s1923_s8 = smov 48   ;;  %s1924_s9 = smov 64  }
  0x18   : > { %s1735_s11 = smul.u32 48, %s206_s10  ;;  %vm662_vm3 = vsmask.f32 3328  ;;  %vm663_vm4 = vsmask.f32 7440  ;;  %vm2104_vm5 = vmor %vm1144_vm1, %vm1145_vm2  ;;  %s1925_s10 = smov 80  }
  0x19   : > { %v2042_v5 = vunpack.c.0.s8 %v238_v1  ;;  %v2075_v23 = vunpack.c.0.s8 %v252_v13  ;;  %vm2111_vm6 = vmor %vm662_vm3, %vm663_vm4  ;;  %vm324_vm7 = vcmask 130048   ;;  %vm328_vm8 = vcmask 261120  }
  0x1a   : > { %s209_s23 = scalar_lea.vmem %s2726_s0, %s1735_s11  ;;  %s1926_s11 = smov 96   ;;  %vm331_vm9 = vcmask 392192   ;;  %vm334_vm10 = vcmask 523264   ;;  %vm337_vm11 = vcmask 654336   ;;  %vm340_vm12 = vcmask 785408  }
  0x1b   : > { %s2031_s24 = scalar_lea.vmem %s209_s23, %s1708_s12  ;;  %s1927_s12 = smov 112   ;;  %vm343_vm13 = vcmask 916480   ;;  %vm351_vm14 = vcmask 1041408   ;;  %vm347_vm15 = vcmask 31744  }
  0x1c   : > { %v2034_v2 = vld [vmem:[%s2031_s24 + $0x18] sm:$0xf]  ;;  %v2037_v3 = vld [vmem:[%s2031_s24] sm:$0xf]  ;;  %v2040_v4 = vld [vmem:[%s2031_s24 + $0x24] sm:$0xf] }
  0x1d   : > { %376 = vrot.lane.b32.xlu0 %v2034_v2, %s1918_s27  ;;  %v233_v6 = vshrl.u32 %v2034_v2, 16  ;;  %521 = vrot.lane.b32.xlu1 %v2034_v2, %s1919_s30  ;;  %v234_v7 = vshrl.u32 %v2040_v4, 16  ;;  %v232_v8 = vpack.i.b16 %v2040_v4, %v2034_v2  ;;  %v2053_v9 = vld [vmem:[%s2031_s24 + $0xc] sm:$0xf]  ;;  %v227_v10 = vshrl.u32 %v2037_v3, 16 }
  0x1e   : > { %517 = vrot.lane.b32.xlu2 %v2037_v3, %s1919_s30  ;;  %v228_v11 = vshrl.u32 %v2053_v9, 16  ;;  %v226_v14 = vpack.i.b16 %v2053_v9, %v2037_v3  ;;  %v703_v18 = vshll.u32 %v2040_v4, 16  ;;  %v691_v22 = vshll.u32 %v2034_v2, 16  ;;  %v223_v29 = vld [vmem:[%s2031_s24 + $0x28] sm:$0x1] }
  0x1f   : > { %v235_v15 = vpack.i.b16 %v234_v7, %v233_v6  ;;  %v2062_v16 = vperm.slane %v232_v8, %v2042_v5  ;;  %v690_v27 = vrot.slane %v233_v6, 4  ;;  %v702_v30 = vrot.slane %v234_v7, 4  ;;  %v221_v33 = vld [vmem:[%s2031_s24 + $0x1c] sm:$0x1]  ;;  %v217_v52 = vld [vmem:[%s2031_s24 + $0x4] sm:$0x1] }
  0x20   : > { %v229_v17 = vpack.i.b16 %v228_v11, %v227_v10  ;;  %v2068_v19 = vperm.slane %v226_v14, %v2042_v5  ;;  %v693_v28 = vrot.slane %v691_v22, 5  ;;  %v705_v31 = vrot.slane %v703_v18, 5  ;;  %v219_v1 = vld [vmem:[%s2031_s24 + $0x10] sm:$0x1] }
  0x21   : > { %v2071_v20 = vperm.slane %v235_v15, %v2042_v5  ;;  %v246_v21 = vrot.slane %v2062_v16, 4  ;;  %v709_v37 = vshll.u32 %v223_v29, 16  ;;  %v697_v39 = vshll.u32 %v221_v33, 16 }
  0x22   : > { %v2078_v24 = vperm.slane %v229_v17, %v2042_v5  ;;  %v694_v38 = vor.u32 %v693_v28, %v690_v27  ;;  %v706_v41 = vor.u32 %v705_v31, %v702_v30  ;;  %v667_v42 = vshll.u32 %v2037_v3, 16 }
  0x23   : > { %v273_v25 = vrot.slane %v2071_v20, 4  ;;  %v248_v26 = vsel %vm247_vm0, %v246_v21, %v2068_v19  ;;  %v1722_v43 = vrot.slane %v2034_v2, 9  ;;  %v1157_v44 = vrot.slane %v221_v33, 5 }
  0x24   : > { %v2085_v32 = vperm.slane %v248_v26, %v2075_v23  ;;  %v679_v48 = vshll.u32 %v2053_v9, 16  ;;  %v711_v49 = vrot.slane %v709_v37, 5  ;;  %v695_v50 = vrot.slane %v694_v38, 4 }
  0x25   : > { %523 = vrot.lane.b32.xlu1 %v2040_v4, %s1919_s30  ;;  %374 = vrot.lane.b32.xlu0 %v2053_v9, %s1918_s27  ;;  %v274_v34 = vsel %vm247_vm0, %v273_v25, %v2078_v24  ;;  %v699_v51 = vrot.slane %v697_v39, 5  ;;  %v1723_v53 = vrot.slane %v2040_v4, 9  ;;  %v707_v55 = vrot.slane %v706_v41, 4 }
  0x26   : > { %519 = vrot.lane.b32.xlu2 %v2053_v9, %s1919_s30  ;;  %v2097_v35 = vperm.slane %v274_v34, %v2075_v23  ;;  %v259_v36 = vrot.slane %v2085_v32, 4  ;;  %v666_v56 = vrot.slane %v227_v10, 4  ;;  %v669_v57 = vrot.slane %v667_v42, 5 }
  0x27   : > { %v1161_v58 = vrot.slane %v223_v29, 5  ;;  %v2120_v60 = vsel %vm2104_vm5, %v1722_v43, %v1157_v44  ;;  %v1720_v61 = vrot.slane %v2037_v3, 9  ;;  %v1149_v62 = vrot.slane %v217_v52, 5 }
  0x28   : > { %v290_v40 = vunpack.c.l.b16 %v2097_v35  ;;  %v260_v46 = vsel %vm247_vm0, 0, %v259_v36  ;;  %v1172_v63 = vshrl.u32 %v2120_v60, 16  ;;  %v673_v0 = vshll.u32 %v217_v52, 16 }
  0x29   : > { %v295_v59 = vunpack.c.l.b16 %v260_v46  ;;  %v678_v2 = vrot.slane %v228_v11, 4  ;;  %v700_v6 = vsel %vm2111_vm6, %v695_v50, %v699_v51  ;;  %v2133_v7 = vsel %vm2104_vm5, %v1723_v53, %v1161_v58 }
  0x2a   : > { %v291_v45 = vpack.c.b16 %v290_v40, %v290_v40  ;;  %v1721_v8 = vrot.slane %v2053_v9, 9  ;;  %v1153_v10 = vrot.slane %v219_v1, 5  ;;  %v670_v12 = vor.u32 %v669_v57, %v666_v56 }
  0x2b   : > { %v1173_v13 = vshrl.u32 %v2133_v7, 16  ;;  %v2141_v11 = vsel %vm2104_vm5, %v1720_v61, %v1149_v62  ;;  %v296_v14 = vpack.c.b16 %v295_v59, %v295_v59  ;;  %v685_v15 = vshll.u32 %v219_v1, 16 }
  0x2c   : > { %v1166_v17 = vshrl.u32 %v2141_v11, 16  ;;  %v2146_v18 = vsel %vm2104_vm5, %v1721_v8, %v1153_v10  ;;  %v712_v26 = vsel %vm2111_vm6, %v707_v55, %v711_v49  ;;  %v671_v28 = vrot.slane %v670_v12, 4 }
  0x2d   : > { %378 = vrot.lane.b32.xlu1 %v2040_v4, %s1918_s27  ;;  %292 = vrot.lane.b32.xlu0 %v291_v45, %s1921_s5  ;;  %v681_v4 = vrot.slane %v679_v48, 5  ;;  %v2148_v21 = vpack.i.b16 %v1173_v13, %v1172_v63  ;;  %v1167_v22 = vshrl.u32 %v2146_v18, 16  ;;  %v1165_v25 = vpack.i.b16 %v2146_v18, %v2141_v11 }
  0x2e   : > { %372 = vrot.lane.b32.xlu2 %v2037_v3, %s1918_s27  ;;  %v1171_v3 = vpack.i.b16 %v2133_v7, %v2120_v60  ;;  %v675_v29 = vrot.slane %v673_v0, 5  ;;  %v687_v31 = vrot.slane %v685_v15, 5  ;;  %v285_v36 = vrot.slane %v2097_v35, 4 }
  0x2f   : > { %v682_v9 = vor.u32 %v681_v4, %v678_v2  ;;  %v2155_v27 = vpack.i.b16 %v1167_v22, %v1166_v17  ;;  %v249_v37 = vrot.slane %v2068_v19, 4  ;;  %v721_v38 = vpack.i.b16 %v712_v26, %v700_v6 }
  0x30   : > { %v676_v33 = vsel %vm2111_vm6, %v671_v28, %v675_v29  ;;  %v275_v39 = vrot.slane %v2078_v24, 4  ;;  %v286_v40 = vsel %vm247_vm0, 0, %v285_v36  ;;  %v723_v42 = vshrl.u32 %v712_v26, 16 }
  0x31   : > { %v683_v30 = vrot.slane %v682_v9, 4  ;;  %v250_v41 = vsel %vm247_vm0, %v2062_v16, %v249_v37  ;;  %v722_v43 = vshrl.u32 %v700_v6, 16  ;;  %v734_v44 = vperm.slane %v721_v38, %v2042_v5 }
  0x32   : > { %v300_v19 = vunpack.c.l.b16 %v286_v40  ;;  %v276_v24 = vsel %vm247_vm0, %v2071_v20, %v275_v39  ;;  %v258_v45 = vperm.slane %v250_v41, %v2075_v23  ;;  %v716_v50 = vshrl.u32 %v676_v33, 16 }
  0x33   : > { %v688_v34 = vsel %vm2111_vm6, %v683_v30, %v687_v31  ;;  %v284_v16 = vperm.slane %v276_v24, %v2075_v23  ;;  %v724_v47 = vpack.i.b16 %v723_v42, %v722_v43  ;;  %v735_v48 = vrot.slane %v734_v44, 4 }
  0x34   : > { %v715_v35 = vpack.i.b16 %v688_v34, %v676_v33  ;;  %v261_v46 = vrot.slane %v258_v45, 4  ;;  %v301_v49 = vpack.c.b16 %v300_v19, %v300_v19  ;;  %v717_v51 = vshrl.u32 %v688_v34, 16 }
  0x35   : > { %297 = vrot.lane.b32.xlu0 %v296_v14, %s1922_s6  ;;  %854 = vrot.lane.b32.xlu1 %v700_v6, %s1918_s27  ;;  %v305_v20 = vunpack.c.l.b16 %v258_v45  ;;  %v310_v54 = vunpack.c.l.b16 %v284_v16  ;;  %v287_v55 = vrot.slane %v284_v16, 4  ;;  %v760_v57 = vperm.slane %v724_v47, %v2042_v5 }
  0x36   : > { %856 = vrot.lane.b32.xlu2 %v712_v26, %s1918_s27  ;;  %v729_v52 = vperm.slane %v715_v35, %v2042_v5  ;;  %v262_v53 = vsel %vm247_vm0, 0, %v261_v46  ;;  %v718_v58 = vpack.i.b16 %v717_v51, %v716_v50 }
  0x37   : > { %v315_v56 = vunpack.c.l.b16 %v262_v53  ;;  %v306_v61 = vpack.c.b16 %v305_v20, %v305_v20  ;;  %v311_v62 = vpack.c.b16 %v310_v54, %v310_v54  ;;  %v288_v63 = vsel %vm247_vm0, 0, %v287_v55 }
  0x38   : > { %v736_v59 = vsel %vm247_vm0, %v735_v48, %v729_v52  ;;  %v761_v2 = vrot.slane %v760_v57, 4  ;;  %v755_v4 = vperm.slane %v718_v58, %v2042_v5  ;;  %v737_v15 = vrot.slane %v729_v52, 4 }
  0x39   : > { %v316_v0 = vpack.c.b16 %v315_v56, %v315_v56  ;;  %v2204_v1 = vperm.slane %v736_v59, %v2075_v23 }
  0x3a   : > { %v762_v10 = vsel %vm247_vm0, %v761_v2, %v755_v4  ;;  %v738_v22 = vsel %vm247_vm0, %v734_v44, %v737_v15  ;;  %v763_v30 = vrot.slane %v755_v4, 4 }
  0x3b   : > { %v747_v8 = vrot.slane %v2204_v1, 4  ;;  %v768_v14 = vperm.slane %v762_v10, %v2075_v23  ;;  %v746_v31 = vperm.slane %v738_v22, %v2075_v23 }
  0x3d   : > { %850 = vrot.lane.b32.xlu0 %v676_v33, %s1918_s27  ;;  %852 = vrot.lane.b32.xlu1 %v688_v34, %s1918_s27  ;;  %v748_v13 = vsel %vm247_vm0, 0, %v747_v8  ;;  %v773_v9 = vrot.slane %v768_v14, 4  ;;  %v778_v28 = vunpack.c.l.b16 %v768_v14  ;;  %v749_v37 = vrot.slane %v746_v31, 4 }
  0x3e   : > { %1304 = vrot.lane.b32.xlu2 %v2120_v60, %s1918_s27  ;;  %v783_v17 = vunpack.c.l.b16 %v748_v13  ;;  %v793_v35 = vunpack.c.l.b16 %v746_v31 }
  0x3f   : > { %v774_v29 = vsel %vm247_vm0, 0, %v773_v9  ;;  %v750_v39 = vsel %vm247_vm0, 0, %v749_v37 }
  0x40   : > { %v788_v36 = vunpack.c.l.b16 %v774_v29  ;;  %v803_v41 = vunpack.c.l.b16 %v750_v39  ;;  %v794_v16 = vpack.c.b16 %v793_v35, %v793_v35 }
  0x42   : > { %v789_v42 = vpack.c.b16 %v788_v36, %v788_v36  ;;  %v804_v44 = vpack.c.b16 %v803_v41, %v803_v41 }
  0x45   : > { %1306 = vrot.lane.b32.xlu0 %v2133_v7, %s1918_s27  ;;  %999 = vrot.lane.b32.xlu1 %v700_v6, %s1919_s30  ;;  %v320_v6 = vunpack.c.l.b16 %v288_v63 }
  0x46   : > { %1001 = vrot.lane.b32.xlu2 %v712_v26, %s1919_s30  ;;  %v784_v26 = vpack.c.b16 %v783_v17, %v783_v17 }
  0x47   : > { %v321_v12 = vpack.c.b16 %v320_v6, %v320_v6 }
  0x4d   : > { %1300 = vrot.lane.b32.xlu0 %v2141_v11, %s1918_s27  ;;  %1302 = vrot.lane.b32.xlu1 %v2146_v18, %s1918_s27 }
  0x4e   : > { %995 = vrot.lane.b32.xlu2 %v676_v33, %s1919_s30  ;;  %v779_v33 = vpack.c.b16 %v778_v28, %v778_v28 }
  0x55   : > { %997 = vrot.lane.b32.xlu0 %v688_v34, %s1919_s30  ;;  %1449 = vrot.lane.b32.xlu1 %v2120_v60, %s1919_s30  ;;  %v764_v34 = vsel %vm247_vm0, %v760_v57, %v763_v30 }
  0x56   : > { %1451 = vrot.lane.b32.xlu2 %v2133_v7, %s1919_s30  ;;  %v772_v38 = vperm.slane %v764_v34, %v2075_v23 }
  0x58   : > { %v775_v40 = vrot.slane %v772_v38, 4  ;;  %v798_v46 = vunpack.c.l.b16 %v772_v38 }
  0x5a   : > { %v776_v43 = vsel %vm247_vm0, 0, %v775_v40  ;;  %v799_v47 = vpack.c.b16 %v798_v46, %v798_v46 }
  0x5b   : > { %v808_v19 = vunpack.c.l.b16 %v776_v43 }
  0x5d   : > { %1445 = vrot.lane.b32.xlu0 %v2141_v11, %s1919_s30  ;;  %1447 = vrot.lane.b32.xlu1 %v2146_v18, %s1919_s30  ;;  %v809_v24 = vpack.c.b16 %v808_v19, %v808_v19 }
  0x5e   : > { %302 = vrot.lane.b32.xlu2 %v301_v49, %s1923_s8 }
  0x65   : > { %307 = vrot.lane.b32.xlu0 %v306_v61, %s1924_s9  ;;  %312 = vrot.lane.b32.xlu1 %v311_v62, %s1925_s10 }
  0x66   : > { %317 = vrot.lane.b32.xlu2 %v316_v0, %s1926_s11 }
  0x6d   : > { %322 = vrot.lane.b32.xlu0 %v321_v12, %s1927_s12  ;;  %780 = vrot.lane.b32.xlu1 %v779_v33, %s1921_s5 }
  0x6e   : > { %805 = vrot.lane.b32.xlu2 %v804_v44, %s1926_s11 }
  0x75   : > { %785 = vrot.lane.b32.xlu0 %v784_v26, %s1922_s6  ;;  %810 = vrot.lane.b32.xlu1 %v809_v24, %s1927_s12 }
  0x78   : > { %v518_v45 = vpop.permute.xlu2 %517 }
  0x79   : > { %v528_v49 = vshrl.u32 %v518_v45, 16 }
  0x7d   : > { %790 = vrot.lane.b32.xlu0 %v789_v42, %s1923_s8 }
  0x80   : > { %v520_v48 = vpop.permute.xlu2 %519 }
  0x81   : > { %v529_v50 = vshrl.u32 %v520_v48, 16  ;;  %v527_v53 = vpack.i.b16 %v520_v48, %v518_v45 }
  0x83   : > { %v530_v20 = vpack.i.b16 %v529_v50, %v528_v49  ;;  %v541_v56 = vperm.slane %v527_v53, %v2042_v5 }
  0x85   : > { %795 = vrot.lane.b32.xlu0 %v794_v16, %s1924_s9  ;;  %v567_v57 = vperm.slane %v530_v20, %v2042_v5  ;;  %v549_v10 = vrot.slane %v541_v56, 4 }
  0x87   : > { %v575_v12 = vrot.slane %v567_v57, 4 }
  0x88   : > { %v373_v54 = vpop.permute.xlu2 %372 }
  0x89   : > { %v383_v55 = vshrl.u32 %v373_v54, 16 }
  0x8d   : > { %800 = vrot.lane.b32.xlu0 %v799_v47, %s1925_s10 }
  0x8f   : > { %v377_v51 = vpop.permute.xlu0 %376  ;;  %v522_v52 = vpop.permute.xlu1 %521 }
  0x90   : > { %v534_v58 = vshrl.u32 %v522_v52, 16  ;;  %v389_v29 = vshrl.u32 %v377_v51, 16  ;;  %v857_v42 = vpop.permute.xlu2 %856 }
  0x91   : > { %v868_v47 = vshrl.u32 %v857_v42, 16 }
  0x97   : > { %v524_v59 = vpop.permute.xlu1 %523  ;;  %v375_v61 = vpop.permute.xlu0 %374 }
  0x98   : > { %v533_v62 = vpack.i.b16 %v524_v59, %v522_v52  ;;  %v535_v63 = vshrl.u32 %v524_v59, 16  ;;  %v382_v0 = vpack.i.b16 %v375_v61, %v373_v54  ;;  %v384_v2 = vshrl.u32 %v375_v61, 16 }
  0x9a   : > { %v536_v4 = vpack.i.b16 %v535_v63, %v534_v58  ;;  %v546_v6 = vperm.slane %v533_v62, %v2042_v5  ;;  %v385_v8 = vpack.i.b16 %v384_v2, %v383_v55  ;;  %v396_v15 = vperm.slane %v382_v0, %v2042_v5 }
  0x9c   : > { %v547_v13 = vrot.slane %v546_v6, 4  ;;  %v572_v14 = vperm.slane %v536_v4, %v2042_v5  ;;  %v422_v17 = vperm.slane %v385_v8, %v2042_v5  ;;  %v550_v9 = vsel %vm247_vm0, %v546_v6, %v549_v10  ;;  %v2274_v4 = vpop.permute.xlu2 %1304 }
  0x9d   : > { %v2237_v26 = vperm.slane %v550_v9, %v2075_v23  ;;  %v404_v34 = vrot.slane %v396_v15, 4 }
  0x9e   : > { %v573_v22 = vrot.slane %v572_v14, 4  ;;  %v576_v28 = vsel %vm247_vm0, %v572_v14, %v575_v12  ;;  %v548_v33 = vsel %vm247_vm0, %v547_v13, %v541_v56  ;;  %v430_v39 = vrot.slane %v422_v17, 4 }
  0x9f   : > { %v379_v30 = vpop.permute.xlu1 %378  ;;  %v2240_v31 = vpop.permute.xlu0 %292  ;;  %v605_v38 = vunpack.c.l.b16 %v2237_v26  ;;  %v2245_v40 = vperm.slane %v576_v28, %v2075_v23  ;;  %v2250_v24 = vperm.slane %v548_v33, %v2075_v23  ;;  %v2270_v56 = vperm.slane %v1171_v3, %v2042_v5 }
  0xa0   : > { %v388_v36 = vpack.i.b16 %v379_v30, %v377_v51  ;;  %v390_v37 = vshrl.u32 %v379_v30, 16  ;;  %v574_v41 = vsel %vm247_vm0, %v573_v22, %v567_v57  ;;  %v561_v22 = vrot.slane %v2237_v26, 4 }
  0xa1   : > { %v606_v19 = vpack.c.b16 %v605_v38, %v605_v38  ;;  %v580_v16 = vperm.slane %v574_v41, %v2075_v23  ;;  %v610_v48 = vunpack.c.l.b16 %v2245_v40  ;;  %v559_v50 = vrot.slane %v2250_v24, 4 }
  0xa2   : > { %v391_v43 = vpack.i.b16 %v390_v37, %v389_v29  ;;  %v401_v44 = vperm.slane %v388_v36, %v2042_v5  ;;  %v1185_v3 = vrot.slane %v2270_v56, 4  ;;  %v1179_v36 = vperm.slane %v1165_v25, %v2042_v5 }
  0xa3   : > { %607 = vrot.lane.b32.xlu2 %v606_v19, %s1924_s9  ;;  %v585_v55 = vrot.slane %v580_v16, 4  ;;  %v611_v62 = vpack.c.b16 %v610_v48, %v610_v48  ;;  %v560_v63 = vsel %vm247_vm0, 0, %v559_v50  ;;  %v590_v60 = vunpack.c.l.b16 %v580_v16 }
  0xa4   : > { %v427_v35 = vperm.slane %v391_v43, %v2042_v5  ;;  %v405_v45 = vsel %vm247_vm0, %v401_v44, %v404_v34  ;;  %v402_v0 = vrot.slane %v401_v44, 4  ;;  %v595_v7 = vunpack.c.l.b16 %v560_v63 }
  0xa5   : > { %v2257_v46 = vperm.slane %v405_v45, %v2075_v23  ;;  %v586_v6 = vsel %vm247_vm0, 0, %v585_v55  ;;  %v591_v37 = vpack.c.b16 %v590_v60, %v590_v60  ;;  %v562_v18 = vsel %vm247_vm0, 0, %v561_v22 }
  0xa6   : > { %v431_v49 = vsel %vm247_vm0, %v427_v35, %v430_v39  ;;  %v428_v59 = vrot.slane %v427_v35, 4  ;;  %v600_v9 = vunpack.c.l.b16 %v586_v6  ;;  %v403_v28 = vsel %vm247_vm0, %v402_v0, %v396_v15  ;;  %v2308_v35 = vpop.permute.xlu2 %1001 }
  0xa7   : > { %v2262_v51 = vpop.permute.xlu0 %297  ;;  %v855_v52 = vpop.permute.xlu1 %854  ;;  %v460_v53 = vunpack.c.l.b16 %v2257_v46  ;;  %v439_v20 = vperm.slane %v431_v49, %v2075_v23  ;;  %v596_v38 = vpack.c.b16 %v595_v7, %v595_v7  ;;  %v2296_v15 = vperm.slane %v403_v28, %v2075_v23 }
  0xa8   : > { %v867_v54 = vshrl.u32 %v855_v52, 16  ;;  %v429_v10 = vsel %vm247_vm0, %v428_v59, %v422_v17  ;;  %v866_v12 = vpack.i.b16 %v857_v42, %v855_v52  ;;  %v601_v11 = vpack.c.b16 %v600_v9, %v600_v9 }
  0xa9   : > { %v461_v57 = vpack.c.b16 %v460_v53, %v460_v53  ;;  %v465_v58 = vunpack.c.l.b16 %v439_v20  ;;  %v442_v34 = vrot.slane %v439_v20, 4  ;;  %v435_v17 = vperm.slane %v429_v10, %v2075_v23 }
  0xaa   : > { %v869_v61 = vpack.i.b16 %v868_v47, %v867_v54  ;;  %v2299_v42 = vperm.slane %v866_v12, %v2042_v5  ;;  %v615_v45 = vunpack.c.l.b16 %v562_v18  ;;  %v414_v16 = vrot.slane %v2296_v15, 4 }
  0xab   : > { %462 = vrot.lane.b32.xlu1 %v461_v57, %s1924_s9  ;;  %v466_v2 = vpack.c.b16 %v465_v58, %v465_v58  ;;  %612 = vrot.lane.b32.xlu2 %v611_v62, %s1925_s10  ;;  %v443_v44 = vsel %vm247_vm0, 0, %v442_v34  ;;  %v445_v19 = vunpack.c.l.b16 %v435_v17  ;;  %v1186_v48 = vsel %vm247_vm0, %v1185_v3, %v1179_v36 }
  0xac   : > { %v2281_v8 = vperm.slane %v869_v61, %v2042_v5  ;;  %v475_v52 = vunpack.c.l.b16 %v443_v44  ;;  %v416_v53 = vrot.slane %v2257_v46, 4  ;;  %v616_v58 = vpack.c.b16 %v615_v45, %v615_v45 }
  0xad   : > { %467 = vrot.lane.b32.xlu0 %v466_v2, %s1925_s10  ;;  %v446_v55 = vpack.c.b16 %v445_v19, %v445_v19  ;;  %v415_v59 = vsel %vm247_vm0, 0, %v414_v16  ;;  %v1187_v0 = vrot.slane %v1179_v36, 4  ;;  %v440_v7 = vrot.slane %v435_v17, 4 }
  0xae   : > { %v906_v39 = vrot.slane %v2281_v8, 4  ;;  %v476_v62 = vpack.c.b16 %v475_v52, %v475_v52  ;;  %v417_v46 = vsel %vm247_vm0, 0, %v416_v53  ;;  %v450_v2 = vunpack.c.l.b16 %v415_v59  ;;  %v2341_v9 = vpop.permute.xlu2 %995 }
  0xaf   : > { %v851_v13 = vpop.permute.xlu0 %850  ;;  %v853_v14 = vpop.permute.xlu1 %852  ;;  %v470_v60 = vunpack.c.l.b16 %v417_v46  ;;  %v1205_v22 = vperm.slane %v2155_v27, %v2042_v5  ;;  %v441_v34 = vsel %vm247_vm0, 0, %v440_v7  ;;  %v880_v27 = vrot.slane %v2299_v42, 4 }
  0xb0   : > { %v861_v29 = vshrl.u32 %v851_v13, 16  ;;  %v860_v30 = vpack.i.b16 %v853_v14, %v851_v13  ;;  %v862_v33 = vshrl.u32 %v853_v14, 16  ;;  %v587_v13 = vrot.slane %v2245_v40, 4 }
  0xb1   : > { %v1210_v14 = vperm.slane %v2148_v21, %v2042_v5  ;;  %v451_v28 = vpack.c.b16 %v450_v2, %v450_v2  ;;  %v2350_v40 = vperm.slane %v1186_v48, %v2075_v23 }
  0xb2   : > { %v863_v41 = vpack.i.b16 %v862_v33, %v861_v29  ;;  %v2293_v26 = vperm.slane %v860_v30, %v2042_v5  ;;  %v1188_v30 = vsel %vm247_vm0, %v2270_v56, %v1187_v0  ;;  %v471_v33 = vpack.c.b16 %v470_v60, %v470_v60 }
  0xb3   : > { %592 = vrot.lane.b32.xlu1 %v591_v37, %s1921_s5  ;;  %597 = vrot.lane.b32.xlu2 %v596_v38, %s1922_s6  ;;  %v588_v21 = vsel %vm247_vm0, 0, %v587_v13  ;;  %v455_v56 = vunpack.c.l.b16 %v441_v34  ;;  %v1211_v17 = vrot.slane %v1210_v14, 4  ;;  %v327_v60 = vsel %vm324_vm7, %v2085_v32, %v2240_v31 }
  0xb4   : > { %v882_v25 = vrot.slane %v2293_v26, 4  ;;  %v900_v43 = vperm.slane %v863_v41, %v2042_v5  ;;  %v620_v41 = vunpack.c.l.b16 %v588_v21  ;;  %v881_v19 = vsel %vm247_vm0, %v880_v27, %v2293_v26 }
  0xb5   : > { %602 = vrot.lane.b32.xlu0 %v601_v11, %s1923_s8  ;;  %v1197_v11 = vrot.slane %v2350_v40, 4  ;;  %v456_v45 = vpack.c.b16 %v455_v56, %v455_v56  ;;  %v1013_v32 = vshrl.u32 %v2308_v35, 16  ;;  %v330_v31 = vsel %vm328_vm8, %v327_v60, %v2262_v51 }
  0xb6   : > { %v907_v47 = vsel %vm247_vm0, %v906_v39, %v900_v43  ;;  %v883_v54 = vsel %vm247_vm0, %v2299_v42, %v882_v25  ;;  %v908_v37 = vrot.slane %v900_v43, 4  ;;  %v1213_v39 = vrot.slane %v1205_v22, 4 }
  0xb7   : > { %v2313_v49 = vpop.permute.xlu0 %1306  ;;  %v2315_v50 = vpop.permute.xlu1 %999  ;;  %v2319_v20 = vperm.slane %v907_v47, %v2075_v23  ;;  %v2326_v61 = vperm.slane %v883_v54, %v2075_v23  ;;  %v1212_v42 = vsel %vm247_vm0, %v1211_v17, %v1205_v22  ;;  %v621_v48 = vpack.c.b16 %v620_v41, %v620_v41 }
  0xb8   : > { %v909_v43 = vsel %vm247_vm0, %v2281_v8, %v908_v37  ;;  %v1214_v44 = vsel %vm247_vm0, %v1210_v14, %v1213_v39  ;;  %v2368_v47 = vpop.permute.xlu2 %1451  ;;  %v1198_v53 = vsel %vm247_vm0, 0, %v1197_v11  ;;  %v2374_v8 = vperm.slane %v881_v19, %v2075_v23 }
  0xb9   : > { %v918_v57 = vrot.slane %v2319_v20, 4  ;;  %v894_v3 = vrot.slane %v2326_v61, 4  ;;  %v917_v52 = vperm.slane %v909_v43, %v2075_v23  ;;  %v1317_v54 = vshrl.u32 %v2274_v4, 16 }
  0xba   : > { %v938_v26 = vunpack.c.l.b16 %v2326_v61  ;;  %v892_v46 = vrot.slane %v2374_v8, 4  ;;  %v1316_v7 = vpack.i.b16 %v2313_v49, %v2274_v4  ;;  %v923_v4 = vunpack.c.l.b16 %v2319_v20 }
  0xbb   : > { %447 = vrot.lane.b32.xlu1 %v446_v55, %s1921_s5  ;;  %v919_v63 = vsel %vm247_vm0, 0, %v918_v57  ;;  %617 = vrot.lane.b32.xlu2 %v616_v58, %s1926_s11  ;;  %v895_v36 = vsel %vm247_vm0, 0, %v894_v3  ;;  %v1318_v55 = vshrl.u32 %v2313_v49, 16  ;;  %v1233_v57 = vunpack.c.l.b16 %v1198_v53 }
  0xbc   : > { %v933_v6 = vunpack.c.l.b16 %v919_v63  ;;  %v948_v38 = vunpack.c.l.b16 %v895_v36  ;;  %v943_v58 = vunpack.c.l.b16 %v917_v52  ;;  %v939_v0 = vpack.c.b16 %v938_v26, %v938_v26 }
  0xbd   : > { %477 = vrot.lane.b32.xlu0 %v476_v62, %s1927_s12  ;;  %v1319_v63 = vpack.i.b16 %v1318_v55, %v1317_v54  ;;  %v1234_v2 = vpack.c.b16 %v1233_v57, %v1233_v57  ;;  %v893_v14 = vsel %vm247_vm0, 0, %v892_v46  ;;  %v1006_v34 = vshrl.u32 %v2341_v9, 16 }
  0xbe   : > { %v934_v29 = vpack.c.b16 %v933_v6, %v933_v6  ;;  %v949_v16 = vpack.c.b16 %v948_v38, %v948_v38  ;;  %v2387_v6 = vperm.slane %v1188_v30, %v2075_v23  ;;  %v944_v61 = vpack.c.b16 %v943_v58, %v943_v58 }
  0xbf   : > { %v2334_v10 = vpop.permute.xlu0 %1300  ;;  %v2336_v12 = vpop.permute.xlu1 %1302  ;;  %v928_v30 = vunpack.c.l.b16 %v893_v14  ;;  %v2411_v36 = vperm.slane %v1316_v7, %v2042_v5  ;;  %v1218_v56 = vperm.slane %v1212_v42, %v2075_v23  ;;  %v924_v39 = vpack.c.b16 %v923_v4, %v923_v4 }
  0xc0   : > { %v1311_v3 = vshrl.u32 %v2334_v10, 16  ;;  %v1312_v13 = vshrl.u32 %v2336_v12, 16  ;;  %v303_v22 = vpop.permute.xlu2 %302  ;;  %v1243_v49 = vunpack.c.l.b16 %v2387_v6  ;;  %v1310_v37 = vpack.i.b16 %v2336_v12, %v2334_v10 }
  0xc1   : > { %v333_v27 = vsel %vm331_vm9, %v330_v31, %v303_v22  ;;  %v2420_v11 = vperm.slane %v1214_v44, %v2075_v23  ;;  %v1011_v10 = vpack.i.b16 %v2308_v35, %v2315_v50  ;;  %v929_v43 = vpack.c.b16 %v928_v30, %v928_v30 }
  0xc2   : > { %v1313_v51 = vpack.i.b16 %v1312_v13, %v1311_v3  ;;  %v1244_v41 = vpack.c.b16 %v1243_v49, %v1243_v49  ;;  %v1228_v35 = vunpack.c.l.b16 %v1218_v56  ;;  %v1199_v26 = vrot.slane %v2387_v6, 4 }
  0xc3   : > { %452 = vrot.lane.b32.xlu1 %v451_v28, %s1922_s6  ;;  %472 = vrot.lane.b32.xlu2 %v471_v33, %s1926_s11  ;;  %v2399_v28 = vperm.slane %v1319_v63, %v2042_v5  ;;  %v920_v33 = vrot.slane %v917_v52, 4  ;;  %v1248_v54 = vunpack.c.l.b16 %v2420_v11  ;;  %v1024_v57 = vperm.slane %v1011_v10, %v2042_v5 }
  0xc4   : > { %v2428_v42 = vperm.slane %v1313_v51, %v2042_v5  ;;  %v1229_v60 = vpack.c.b16 %v1228_v35, %v1228_v35  ;;  %v1225_v51 = vrot.slane %v2420_v11, 4 }
  0xc5   : > { %935 = vrot.lane.b32.xlu0 %v934_v29, %s1923_s8  ;;  %v1012_v29 = vshrl.u32 %v2315_v50, 16  ;;  %v1356_v20 = vrot.slane %v2399_v28, 4  ;;  %v921_v19 = vsel %vm247_vm0, 0, %v920_v33  ;;  %v1223_v50 = vrot.slane %v1218_v56, 4 }
  0xc6   : > { %v953_v53 = vunpack.c.l.b16 %v921_v19  ;;  %v1249_v14 = vpack.c.b16 %v1248_v54, %v1248_v54 }
  0xc7   : > { %v2358_v18 = vpop.permute.xlu0 %997  ;;  %v2360_v25 = vpop.permute.xlu1 %1449  ;;  %v1014_v12 = vpack.i.b16 %v1013_v32, %v1012_v29  ;;  %v1357_v55 = vsel %vm247_vm0, %v1356_v20, %v2428_v42  ;;  %v1200_v32 = vsel %vm247_vm0, 0, %v1199_v26  ;;  %v1025_v29 = vrot.slane %v1024_v57, 4 }
  0xc8   : > { %v1007_v52 = vshrl.u32 %v2358_v18, 16  ;;  %v1363_v7 = vperm.slane %v1357_v55, %v2075_v23  ;;  %v954_v13 = vpack.c.b16 %v953_v53, %v953_v53  ;;  %v1005_v22 = vpack.i.b16 %v2358_v18, %v2341_v9 }
  0xc9   : > { %v2441_v58 = vperm.slane %v1014_v12, %v2042_v5  ;;  %v1253_v9 = vunpack.c.l.b16 %v1200_v32  ;;  %v1226_v12 = vsel %vm247_vm0, 0, %v1225_v51 }
  0xca   : > { %v1008_v3 = vpack.i.b16 %v1007_v52, %v1006_v34  ;;  %v1373_v30 = vunpack.c.l.b16 %v1363_v7  ;;  %v1019_v18 = vperm.slane %v1005_v22, %v2042_v5 }
  0xcb   : > { %457 = vrot.lane.b32.xlu1 %v456_v45, %s1923_s8  ;;  %622 = vrot.lane.b32.xlu2 %v621_v48, %s1927_s12  ;;  %v1330_v45 = vrot.slane %v2411_v36, 4  ;;  %v318_v48 = vpop.permute.xlu2 %317  ;;  %v1051_v4 = vrot.slane %v2441_v58, 4 }
  0xcc   : > { %v2459_v34 = vperm.slane %v1008_v3, %v2042_v5  ;;  %v1026_v56 = vsel %vm247_vm0, %v1025_v29, %v1019_v18  ;;  %v1027_v19 = vrot.slane %v1019_v18, 4 }
  0xcd   : > { %950 = vrot.lane.b32.xlu0 %v949_v16, %s1926_s11  ;;  %v1324_v16 = vperm.slane %v1310_v37, %v2042_v5  ;;  %v2475_v11 = vperm.slane %v1026_v56, %v2075_v23 }
  0xce   : > { %v1028_v26 = vsel %vm247_vm0, %v1024_v57, %v1027_v19 }
  0xcf   : > { %v2381_v59 = vpop.permute.xlu0 %1445  ;;  %v2383_v62 = vpop.permute.xlu1 %1447  ;;  %v1331_v46 = vsel %vm247_vm0, %v1330_v45, %v1324_v16  ;;  %v1332_v33 = vrot.slane %v1324_v16, 4  ;;  %v1258_v16 = vunpack.c.l.b16 %v1226_v12  ;;  %v1037_v35 = vrot.slane %v2475_v11, 4 }
  0xd0   : > { %v2453_v31 = vperm.slane %v1331_v46, %v2075_v23  ;;  %v2498_v3 = vperm.slane %v1028_v26, %v2075_v23 }
  0xd1   : > { %v1259_v55 = vpack.c.b16 %v1258_v16, %v1258_v16 }
  0xd2   : > { %v1342_v37 = vrot.slane %v2453_v31, 4 }
  0xd3   : > { %940 = vrot.lane.b32.xlu1 %v939_v0, %s1924_s9  ;;  %945 = vrot.lane.b32.xlu2 %v944_v61, %s1925_s10  ;;  %v1224_v61 = vsel %vm247_vm0, 0, %v1223_v50 }
  0xd4   : > { %v1238_v49 = vunpack.c.l.b16 %v1224_v61  ;;  %v806_v61 = vpop.permute.xlu2 %805 }
  0xd5   : > { %1235 = vrot.lane.b32.xlu0 %v1234_v2, %s1922_s6 }
  0xd7   : > { %v308_v21 = vpop.permute.xlu0 %307  ;;  %v313_v17 = vpop.permute.xlu1 %312 }
  0xd8   : > { %v336_v38 = vsel %vm334_vm10, %v333_v27, %v308_v21  ;;  %v1239_v21 = vpack.c.b16 %v1238_v49, %v1238_v49  ;;  %v1052_v27 = vsel %vm247_vm0, %v1051_v4, %v2459_v34 }
  0xd9   : > { %v339_v44 = vsel %vm337_vm11, %v336_v38, %v313_v17  ;;  %v1374_v38 = vpack.c.b16 %v1373_v30, %v1373_v30  ;;  %v1254_v17 = vpack.c.b16 %v1253_v9, %v1253_v9  ;;  %v1058_v10 = vperm.slane %v1052_v27, %v2075_v23 }
  0xda   : > { %v342_v63 = vsel %vm340_vm12, %v339_v44, %v318_v48  ;;  %v1368_v48 = vrot.slane %v1363_v7, 4  ;;  %v1456_v30 = vshrl.u32 %v2381_v59, 16  ;;  %v1463_v27 = vshrl.u32 %v2368_v47, 16 }
  0xdb   : > { %925 = vrot.lane.b32.xlu1 %v924_v39, %s1921_s5  ;;  %930 = vrot.lane.b32.xlu2 %v929_v43, %s1922_s6  ;;  %v1333_v39 = vsel %vm247_vm0, %v2411_v36, %v1332_v33  ;;  %v1461_v36 = vpack.i.b16 %v2368_v47, %v2360_v25  ;;  %v1068_v44 = vunpack.c.l.b16 %v1058_v10  ;;  %v1063_v4 = vrot.slane %v1058_v10, 4 }
  0xdc   : > { %v2479_v43 = vperm.slane %v1333_v39, %v2075_v23  ;;  %v1457_v33 = vshrl.u32 %v2383_v62, 16 }
  0xdd   : > { %1245 = vrot.lane.b32.xlu0 %v1244_v41, %s1924_s9  ;;  %v1343_v41 = vsel %vm247_vm0, 0, %v1342_v37  ;;  %v2487_v53 = vperm.slane %v1461_v36, %v2042_v5  ;;  %v1069_v46 = vpack.c.b16 %v1068_v44, %v1068_v44  ;;  %v1358_v37 = vrot.slane %v2428_v42, 4 }
  0xde   : > { %v1378_v45 = vunpack.c.l.b16 %v1343_v41  ;;  %v1344_v52 = vrot.slane %v2479_v43, 4  ;;  %v1458_v56 = vpack.i.b16 %v1457_v33, %v1456_v30  ;;  %v1388_v42 = vunpack.c.l.b16 %v2479_v43 }
  0xdf   : > { %v323_v0 = vpop.permute.xlu0 %322 }
  0xe0   : > { %v345_v2 = vsel %vm343_vm13, %v342_v63, %v323_v0  ;;  %v1379_v54 = vpack.c.b16 %v1378_v45, %v1378_v45  ;;  %v1369_v63 = vsel %vm247_vm0, 0, %v1368_v48  ;;  %v1455_v0 = vpack.i.b16 %v2383_v62, %v2381_v59 }
  0xe1   : > { %v352_v6 = vsel %vm351_vm14, %v345_v2, 0  ;;  %v1038_v2 = vsel %vm247_vm0, 0, %v1037_v35  ;;  %v1345_v7 = vsel %vm247_vm0, 0, %v1344_v52  ;;  %v1064_v59 = vsel %vm247_vm0, 0, %v1063_v4 }
  0xe2   : > { %361 = vmatpush.bf16.msra.mxu0 %v352_v6  ;;  %v1475_v6 = vrot.slane %v2487_v53, 4  ;;  %v2505_v22 = vperm.slane %v1455_v0, %v2042_v5  ;;  %v1398_v32 = vunpack.c.l.b16 %v1345_v7  ;;  %v1462_v62 = vshrl.u32 %v2360_v25, 16 }
  0xe3   : > { %955 = vrot.lane.b32.xlu1 %v954_v13, %s1927_s12  ;;  %1230 = vrot.lane.b32.xlu2 %v1229_v60, %s1921_s5  ;;  %v781_v60 = vpop.permute.xlu1 %780  ;;  %v1383_v13 = vunpack.c.l.b16 %v1369_v63  ;;  %v1078_v41 = vunpack.c.l.b16 %v1064_v59  ;;  %v1359_v25 = vsel %vm247_vm0, %v2399_v28, %v1358_v37  ;;  %v1495_v45 = vperm.slane %v1458_v56, %v2042_v5 }
  0xe4   : > { %v814_v57 = vsel %vm324_vm7, %v2204_v1, %v781_v60  ;;  %v1039_v1 = vrot.slane %v2498_v3, 4  ;;  %v1476_v9 = vsel %vm247_vm0, %v1475_v6, %v2505_v22  ;;  %v1464_v36 = vpack.i.b16 %v1463_v27, %v1462_v62 }
  0xe5   : > { %1250 = vrot.lane.b32.xlu0 %v1249_v14, %s1925_s10  ;;  %v1073_v14 = vunpack.c.l.b16 %v1038_v2  ;;  %v1384_v18 = vpack.c.b16 %v1383_v13, %v1383_v13  ;;  %v1389_v48 = vpack.c.b16 %v1388_v42, %v1388_v42  ;;  %v1367_v43 = vperm.slane %v1359_v25, %v2075_v23 }
  0xe6   : > { %v1079_v52 = vpack.c.b16 %v1078_v41, %v1078_v41  ;;  %v1500_v26 = vperm.slane %v1464_v36, %v2042_v5  ;;  %v1083_v2 = vunpack.c.l.b16 %v2498_v3 }
  0xe7   : > { %v786_v20 = vpop.permute.xlu0 %785  ;;  %v1074_v51 = vpack.c.b16 %v1073_v14, %v1073_v14  ;;  %v1393_v0 = vunpack.c.l.b16 %v1367_v43  ;;  %v1370_v7 = vrot.slane %v1367_v43, 4 }
  0xe8   : > { %v816_v29 = vsel %vm328_vm8, %v814_v57, %v786_v20  ;;  %v1399_v20 = vpack.c.b16 %v1398_v32, %v1398_v32  ;;  %v1084_v13 = vpack.c.b16 %v1083_v2, %v1083_v2  ;;  %v1501_v14 = vrot.slane %v1500_v26, 4 }
  0xe9   : > { %v1394_v57 = vpack.c.b16 %v1393_v0, %v1393_v0  ;;  %v1371_v4 = vsel %vm247_vm0, 0, %v1370_v7 }
  0xeb   : > { %1240 = vrot.lane.b32.xlu1 %v1239_v21, %s1923_s8  ;;  %1375 = vrot.lane.b32.xlu2 %v1374_v38, %s1921_s5  ;;  %v1040_v38 = vsel %vm247_vm0, 0, %v1039_v1  ;;  %v811_v19 = vpop.permute.xlu1 %810  ;;  %v1502_v1 = vsel %vm247_vm0, %v1501_v14, %v1495_v45 }
  0xec   : > { %v1093_v10 = vunpack.c.l.b16 %v1040_v38 }
  0xed   : > { %1255 = vrot.lane.b32.xlu0 %v1254_v17, %s1926_s11  ;;  %v2522_v17 = vperm.slane %v1476_v9, %v2075_v23 }
  0xef   : > { %v791_v50 = vpop.permute.xlu0 %790  ;;  %v1487_v16 = vrot.slane %v2522_v17, 4 }
  0xf0   : > { %v818_v21 = vsel %vm331_vm9, %v816_v29, %v791_v50  ;;  %v1053_v50 = vrot.slane %v2459_v34, 4  ;;  %v1403_v29 = vunpack.c.l.b16 %v1371_v4 }
  0xf1   : > { %v1488_v63 = vsel %vm247_vm0, 0, %v1487_v16 }
  0xf2   : > { %v1054_v60 = vsel %vm247_vm0, %v2441_v58, %v1053_v50 }
  0xf3   : > { %1380 = vrot.lane.b32.xlu1 %v1379_v54, %s1922_s6  ;;  %1070 = vrot.lane.b32.xlu2 %v1069_v46, %s1921_s5  ;;  %v1094_v54 = vpack.c.b16 %v1093_v10, %v1093_v10  ;;  %v1503_v46 = vrot.slane %v1495_v45, 4  ;;  %v1062_v6 = vperm.slane %v1054_v60, %v2075_v23 }
  0xf5   : > { %1260 = vrot.lane.b32.xlu0 %v1259_v55, %s1927_s12  ;;  %v1504_v5 = vsel %vm247_vm0, %v1500_v26, %v1503_v46  ;;  %v1088_v58 = vunpack.c.l.b16 %v1062_v6  ;;  %v1065_v30 = vrot.slane %v1062_v6, 4 }
  0xf7   : > { %v796_v49 = vpop.permute.xlu0 %795  ;;  %v1089_v9 = vpack.c.b16 %v1088_v58, %v1088_v58  ;;  %v1066_v37 = vsel %vm247_vm0, 0, %v1065_v30 }
  0xf8   : > { %v820_v47 = vsel %vm334_vm10, %v818_v21, %v796_v49  ;;  %v1512_v49 = vperm.slane %v1504_v5, %v2075_v23  ;;  %v1477_v21 = vrot.slane %v2505_v22, 4 }
  0xfa   : > { %v1538_v33 = vunpack.c.l.b16 %v1512_v49  ;;  %v1478_v38 = vsel %vm247_vm0, %v2487_v53, %v1477_v21  ;;  %v1515_v16 = vrot.slane %v1512_v49, 4 }
  0xfb   : > { %1385 = vrot.lane.b32.xlu1 %v1384_v18, %s1923_s8  ;;  %1075 = vrot.lane.b32.xlu2 %v1074_v51, %s1922_s6  ;;  %v1404_v18 = vpack.c.b16 %v1403_v29, %v1403_v29  ;;  %v1508_v51 = vperm.slane %v1502_v1, %v2075_v23  ;;  %v1486_v22 = vperm.slane %v1478_v38, %v2075_v23 }
  0xfc   : > { %v1539_v27 = vpack.c.b16 %v1538_v33, %v1538_v33  ;;  %v1516_v43 = vsel %vm247_vm0, 0, %v1515_v16  ;;  %v346_v16 = vld [vmem:[%s2727_s1] sm:$0xf] }
  0xfd   : > { %1400 = vrot.lane.b32.xlu0 %v1399_v20, %s1926_s11  ;;  %v2527_v39 = vpop.permute.xlu2 %607  ;;  %v1098_v20 = vunpack.c.l.b16 %v1066_v37  ;;  %v1518_v62 = vunpack.c.l.b16 %v1508_v51  ;;  %v1513_v56 = vrot.slane %v1508_v51, 4  ;;  %v1489_v36 = vrot.slane %v1486_v22, 4  ;;  %1709 = vmatmul.msk.bf16.vlgmr.msra.gmra.mxu0 %vm347_vm15, %v346_v16 }
  0xff   : > { %v801_v12 = vpop.permute.xlu0 %800  ;;  %v1099_v42 = vpack.c.b16 %v1098_v20, %v1098_v20  ;;  %v1514_v41 = vsel %vm247_vm0, 0, %v1513_v56  ;;  %v1490_v53 = vsel %vm247_vm0, 0, %v1489_v36 }
 0x100   : > { %v822_v44 = vsel %vm337_vm11, %v820_v47, %v801_v12  ;;  %v1519_v47 = vpack.c.b16 %v1518_v62, %v1518_v62  ;;  %v1528_v10 = vunpack.c.l.b16 %v1514_v41 }
 0x101   : > { %v824_v35 = vsel %vm340_vm12, %v822_v44, %v806_v61  ;;  %v1523_v61 = vunpack.c.l.b16 %v1488_v63 }
 0x102   : > { %v826_v28 = vsel %vm343_vm13, %v824_v35, %v811_v19  ;;  %v1533_v19 = vunpack.c.l.b16 %v1486_v22  ;;  %v1529_v44 = vpack.c.b16 %v1528_v10, %v1528_v10  ;;  %v1543_v35 = vunpack.c.l.b16 %v1490_v53  ;;  %v1714_v53 = vld [vmem:[%s2727_s1 + $0xc] sm:$0xf] }
 0x103   : > { %1390 = vrot.lane.b32.xlu1 %v1389_v48, %s1924_s9  ;;  %v832_v55 = vsel %vm351_vm14, %v826_v28, 0  ;;  %1080 = vrot.lane.b32.xlu2 %v1079_v52, %s1923_s8  ;;  %v1524_v32 = vpack.c.b16 %v1523_v61, %v1523_v61  ;;  %v1548_v28 = vunpack.c.l.b16 %v1516_v43 }
 0x104   : > { %841 = vmatpush.bf16.msra.mxu3 %v832_v55  ;;  %v1534_v48 = vpack.c.b16 %v1533_v19, %v1533_v19  ;;  %v1544_v63 = vpack.c.b16 %v1543_v35, %v1543_v35  ;;  %v1710_v35 = vld [vmem:[%s2727_s1 + $0x4] sm:$0xf] }
 0x105   : > { %1095 = vrot.lane.b32.xlu0 %v1094_v54, %s1926_s11  ;;  %v2544_v34 = vpop.permute.xlu2 %612  ;;  %v1549_v0 = vpack.c.b16 %v1548_v28, %v1548_v28 }
 0x107   : > { %1715 = vmatmul.msk.bf16.vlgmr.msra.gmra.mxu3 %vm347_vm15, %v1714_v53 }
 0x10b   : > { %1395 = vrot.lane.b32.xlu1 %v1394_v57, %s1925_s10  ;;  %1085 = vrot.lane.b32.xlu2 %v1084_v13, %s1924_s9 }
 0x10d   : > { %1525 = vrot.lane.b32.xlu0 %v1524_v32, %s1922_s6  ;;  %v598_v3 = vpop.permute.xlu2 %597 }
 0x113   : > { %1090 = vrot.lane.b32.xlu1 %v1089_v9, %s1925_s10  ;;  %1405 = vrot.lane.b32.xlu2 %v1404_v18, %s1927_s12 }
 0x115   : > { %1540 = vrot.lane.b32.xlu0 %v1539_v27, %s1925_s10  ;;  %v618_v59 = vpop.permute.xlu2 %617  ;;  %s202_s10 = sand.u32 1, %s1891_s16  }
 0x11b   : > { %1100 = vrot.lane.b32.xlu1 %v1099_v42, %s1927_s12  ;;  %1520 = vrot.lane.b32.xlu2 %v1519_v47, %s1921_s5 }
 0x11d   : > { %v463_v25 = vpop.permute.xlu1 %462  ;;  %v473_v12 = vpop.permute.xlu2 %472 }
 0x11f   : > { %v468_v45 = vpop.permute.xlu0 %467 }
 0x123   : > { %1530 = vrot.lane.b32.xlu1 %v1529_v44, %s1923_s8  ;;  %1535 = vrot.lane.b32.xlu2 %v1534_v48, %s1924_s9  ;;  %s1731_s9 = sshll.u32 %s1903_s19, 1 }
 0x125   : > { %v593_v23 = vpop.permute.xlu1 %592  ;;  %v623_v52 = vpop.permute.xlu2 %622 }
 0x126   : > { %v626_v50 = vsel %vm324_vm7, %v2250_v24, %v593_v23 }
 0x127   : > { %v628_v54 = vsel %vm328_vm8, %v626_v50, %v598_v3  ;;  %v603_v55 = vpop.permute.xlu0 %602 }
 0x128   : > { %v630_v26 = vsel %vm331_vm9, %v628_v54, %v603_v55  ;;  %v1716_v55 = vld [vmem:[%s2727_s1 + $0x10] sm:$0xf] }
 0x129   : > { %v632_v46 = vsel %vm334_vm10, %v630_v26, %v2527_v39 }
 0x12a   : > { %v634_v2 = vsel %vm337_vm11, %v632_v46, %v2544_v34 }
 0x12b   : > { %1545 = vrot.lane.b32.xlu1 %v1544_v63, %s1926_s11  ;;  %v636_v60 = vsel %vm340_vm12, %v634_v2, %v618_v59  ;;  %1550 = vrot.lane.b32.xlu2 %v1549_v0, %s1927_s12  ;;  %v1724_v63 = vld [vmem:[%s2727_s1 + $0x18] sm:$0xf]  ;;  %s1619_s11 = sadd.s32 %s1899_s18, %s1731_s9  ;;  %s1705_s12 = sshll.u32 %s202_s10, 2 }
 0x12c   : > { %v638_v24 = vsel %vm343_vm13, %v636_v60, %v623_v52  ;;  %s1732_s13 = sshll.u32 %s1619_s11, 2  ;;  %s204_s27 = scalar_lea.vmem [#allocation3], %s1705_s12 }
 0x12d   : > { %v448_v61 = vpop.permute.xlu1 %447  ;;  %v644_v7 = vsel %vm351_vm14, %v638_v24, 0  ;;  %v946_v5 = vpop.permute.xlu2 %945  ;;  %s1621_s24 = scalar_lea.hbm %s2730_s4, %s1732_s13  ;;  %s1623_s30 = sshll.u32 %s204_s27, 4  ;;  %s1624_s30 = int_to_ptr.vmem [resolvable:$true] %s1623_s30 }
 0x12e   : > { %653 = vmatpush.bf16.msra.mxu2 %v644_v7  ;;  %v481_v34 = vsel %vm324_vm7, %v2296_v15, %v448_v61  ;;  %s1625_s19 = sshll.u32 %s1621_s24, 4  ;;  %s1609_s18 = scalar_lea.sflag [#allocation4], %s202_s10  ;;  %s1626_s19 = int_to_ptr.hbm [resolvable:$true] %s1625_s19 }
 0x12f   : > { %v478_v57 = vpop.permute.xlu0 %477  ;;  %s1835_s5 = sshra.s32 %s1626_s19, 4  ;;  %s1841_s11 = scalar_lea.hbm %s2730_s4, 16  ;;  %s1836_s5 = int_to_ptr.hbm [resolvable:$true] %s1835_s5 }
 0x130   : > { %s1837_s6 = scalar_lea.hbm %s1836_s5, 4  ;;  %p1842_p2 = scmp.lt.s32.totalorder %s1836_s5, %s2730_s4 }
 0x131   : > { %p1838_p13 = scmp.ne.s32.totalorder %s1836_s5, %s1837_s6  ;;  %p1843_p4 = scmp.lt.s32.totalorder %s1841_s11, %s1837_s6 }
 0x133   : > { %p1839_p0 = pnand %p1838_p13, %p2005_p3  ;;  %p1844_p5 = por %p1843_p4, %p1842_p2 }
 0x135   : > { %v453_v39 = vpop.permute.xlu1 %452  ;;  %v931_v13 = vpop.permute.xlu2 %930  ;;  %p1840_p1 = pneg %p1839_p0 }
 0x136   : > { %v483_v14 = vsel %vm328_vm8, %v481_v34, %v453_v39  ;;  %v1591_v34 = vld [vmem:[%s2728_s2] sm:$0xff] }
 0x137   : > { %v936_v6 = vpop.permute.xlu0 %935  ;;  %p1845_p6 = pnand %p1844_p5, %p1840_p1 }
 0x13d   : > { %v458_v32 = vpop.permute.xlu1 %457  ;;  %v1231_v33 = vpop.permute.xlu2 %1230 }
 0x13e   : > { %v485_v4 = vsel %vm331_vm9, %v483_v14, %v458_v32  ;;  %v1598_v14 = vld [vmem:[%s2729_s3] sm:$0xff] }
 0x13f   : > { %v487_v49 = vsel %vm334_vm10, %v485_v4, %v463_v25  ;;  %v951_v58 = vpop.permute.xlu0 %950  ;;  %v1928_v4 = vmov 0  }
 0x140   : > { %v489_v3 = vsel %vm337_vm11, %v487_v49, %v468_v45  ;;  %1819 = vset.pattern.permute.xlu0 %v1928_v4  ;;  %1820 = vset.pattern.permute.xlu1 %v1928_v4 }
 0x141   : > { %v491_v29 = vsel %vm340_vm12, %v489_v3, %v473_v12  ;;  %1594 = vperm.xlu0 %1819, %v1591_v34   ;;  %1601 = vperm.xlu1 %1820, %v1598_v14  }
 0x142   : > { %v493_v30 = vsel %vm343_vm13, %v491_v29, %v478_v57 }
 0x143   : > { %v499_v1 = vsel %vm351_vm14, %v493_v30, 0 }
 0x144   : > { %508 = vmatpush.bf16.msra.mxu1 %v499_v1 }
 0x145   : > { %v941_v9 = vpop.permute.xlu1 %940  ;;  %v1376_v18 = vpop.permute.xlu2 %1375 }
 0x146   : > { %v1409_v0 = vsel %vm324_vm7, %v2453_v31, %v1376_v18  ;;  %v1726_v31 = vld [vmem:[%s2727_s1 + $0x1c] sm:$0xf] }
 0x147   : > { %v1236_v15 = vpop.permute.xlu0 %1235  ;;  %1711 = vmatmul.msk.bf16.vlgmr.msra.gmra.mxu1 %vm347_vm15, %v1710_v35 }
 0x14d   : > { %v926_v37 = vpop.permute.xlu1 %925  ;;  %v1071_v47 = vpop.permute.xlu2 %1070 }
 0x14e   : > { %v959_v51 = vsel %vm324_vm7, %v2374_v8, %v926_v37  ;;  %v1264_v8 = vsel %vm324_vm7, %v2350_v40, %v1231_v33  ;;  %v1712_v40 = vld [vmem:[%s2727_s1 + $0x8] sm:$0xf]  ;;  %v1104_v49 = vsel %vm324_vm7, %v2475_v11, %v1071_v47  ;;  %v1718_v37 = vld [vmem:[%s2727_s1 + $0x14] sm:$0xf] }
 0x14f   : > { %v961_v21 = vsel %vm328_vm8, %v959_v51, %v931_v13  ;;  %v1246_v27 = vpop.permute.xlu0 %1245  ;;  %v1266_v25 = vsel %vm328_vm8, %v1264_v8, %v1236_v15  ;;  %1713 = vmatmul.msk.bf16.vlgmr.msra.gmra.mxu2 %vm347_vm15, %v1712_v40 }
 0x150   : > { %v963_v20 = vsel %vm331_vm9, %v961_v21, %v936_v6 }
 0x151   : > { %v965_v59 = vsel %vm334_vm10, %v963_v20, %v941_v9 }
 0x152   : > { %v967_v62 = vsel %vm337_vm11, %v965_v59, %v946_v5 }
 0x153   : > { %v969_v38 = vsel %vm340_vm12, %v967_v62, %v951_v58 }
 0x155   : > { %v956_v56 = vpop.permute.xlu1 %955  ;;  %v1076_v36 = vpop.permute.xlu2 %1075 }
 0x156   : > { %v971_v42 = vsel %vm343_vm13, %v969_v38, %v956_v56  ;;  %v1106_v58 = vsel %vm328_vm8, %v1104_v49, %v1076_v36 }
 0x157   : > { %v1251_v41 = vpop.permute.xlu0 %1250  ;;  %v977_v22 = vsel %vm351_vm14, %v971_v42, 0 }
 0x158   : > { %986 = vmatpush.bf16.msrb.mxu0 %v977_v22 }
 0x15b   : > { %1717 = vmatmul.msk.bf16.vlgmr.msrb.gmra.mxu0 %vm347_vm15, %v1716_v55 }
 0x15d   : > { %v1241_v10 = vpop.permute.xlu1 %1240  ;;  %v1081_v28 = vpop.permute.xlu2 %1080 }
 0x15e   : > { %v1268_v12 = vsel %vm331_vm9, %v1266_v25, %v1241_v10  ;;  %v1108_v3 = vsel %vm331_vm9, %v1106_v58, %v1081_v28 }
 0x15f   : > { %v1256_v19 = vpop.permute.xlu0 %1255  ;;  %v1270_v45 = vsel %vm334_vm10, %v1268_v12, %v1246_v27 }
 0x160   : > { %v1272_v44 = vsel %vm337_vm11, %v1270_v45, %v1251_v41 }
 0x161   : > { %v1274_v43 = vsel %vm340_vm12, %v1272_v44, %v1256_v19 }
 0x165   : > { %v1381_v48 = vpop.permute.xlu1 %1380  ;;  %v1086_v26 = vpop.permute.xlu2 %1085 }
 0x166   : > { %v1411_v2 = vsel %vm328_vm8, %v1409_v0, %v1381_v48  ;;  %v1110_v30 = vsel %vm334_vm10, %v1108_v3, %v1086_v26 }
 0x167   : > { %v1261_v23 = vpop.permute.xlu0 %1260 }
 0x168   : > { %v1276_v50 = vsel %vm343_vm13, %v1274_v43, %v1261_v23 }
 0x169   : > { %v1282_v52 = vsel %vm351_vm14, %v1276_v50, 0 }
 0x16a   : > { %1291 = vmatpush.bf16.msrb.mxu2 %v1282_v52 }
 0x16d   : > { %v1386_v54 = vpop.permute.xlu1 %1385  ;;  %1725 = vmatmul.msk.bf16.vlgmr.msrb.gmra.mxu2 %vm347_vm15, %v1724_v63  ;;  %v1406_v57 = vpop.permute.xlu2 %1405 }
 0x16e   : > { %v1413_v60 = vsel %vm331_vm9, %v1411_v2, %v1386_v54 }
 0x16f   : > { %v1401_v7 = vpop.permute.xlu0 %1400 }
 0x175   : > { %v1391_v46 = vpop.permute.xlu1 %1390  ;;  %v1521_v33 = vpop.permute.xlu2 %1520 }
 0x176   : > { %v1415_v24 = vsel %vm334_vm10, %v1413_v60, %v1391_v46  ;;  %v1554_v27 = vsel %vm324_vm7, %v2522_v17, %v1521_v33  ;;  %v1728_v17 = vld [vmem:[%s2727_s1 + $0x20] sm:$0xf] }
 0x177   : > { %v1096_v29 = vpop.permute.xlu0 %1095 }
 0x17a   : > { %v363_v10 = vpop.f32.mrf.mxu0 }
 0x17d   : > { %v1396_v61 = vpop.permute.xlu1 %1395  ;;  %v1536_v21 = vpop.permute.xlu2 %1535 }
 0x17e   : > { %v1417_v5 = vsel %vm337_vm11, %v1415_v24, %v1396_v61 }
 0x17f   : > { %v1419_v39 = vsel %vm340_vm12, %v1417_v5, %v1401_v7  ;;  %v1526_v51 = vpop.permute.xlu0 %1525 }
 0x180   : > { %v1421_v6 = vsel %vm343_vm13, %v1419_v39, %v1406_v57  ;;  %v1556_v59 = vsel %vm328_vm8, %v1554_v27, %v1526_v51 }
 0x181   : > { %v1427_v13 = vsel %vm351_vm14, %v1421_v6, 0 }
 0x182   : > { %1436 = vmatpush.bf16.msrb.mxu3 %v1427_v13  ;;  %v365_v19 = vpop.f32.mrf.mxu0 }
 0x185   : > { %v1091_v32 = vpop.permute.xlu1 %1090  ;;  %1727 = vmatmul.msk.bf16.vlgmr.msrb.gmra.mxu3 %vm347_vm15, %v1726_v31  ;;  %v1551_v41 = vpop.permute.xlu2 %1550 }
 0x186   : > { %v1112_v1 = vsel %vm337_vm11, %v1110_v30, %v1091_v32 }
 0x187   : > { %v1114_v15 = vsel %vm340_vm12, %v1112_v1, %v1096_v29  ;;  %v1541_v38 = vpop.permute.xlu0 %1540 }
 0x18a   : > { %v843_v45 = vpop.f32.mrf.mxu3 }
 0x18d   : > { %v1101_v9 = vpop.permute.xlu1 %1100 }
 0x18e   : > { %v1116_v18 = vsel %vm343_vm13, %v1114_v15, %v1101_v9 }
 0x18f   : > { %v1122_v11 = vsel %vm351_vm14, %v1116_v18, 0 }
 0x190   : > { %1131 = vmatpush.bf16.msrb.mxu1 %v1122_v11 }
 0x192   : > { %v845_v40 = vpop.f32.mrf.mxu3 }
 0x193   : > { %1719 = vmatmul.msk.bf16.vlgmr.msrb.gmra.mxu1 %vm347_vm15, %v1718_v37 }
 0x195   : > { %v1531_v20 = vpop.permute.xlu1 %1530 }
 0x196   : > { %v1558_v62 = vsel %vm331_vm9, %v1556_v59, %v1531_v20 }
 0x197   : > { %v1560_v56 = vsel %vm334_vm10, %v1558_v62, %v1536_v21 }
 0x198   : > { %v1562_v47 = vsel %vm337_vm11, %v1560_v56, %v1541_v38 }
 0x19d   : > { %v1546_v42 = vpop.permute.xlu1 %1545 }
 0x19e   : > { %v1564_v22 = vsel %vm340_vm12, %v1562_v47, %v1546_v42 }
 0x19f   : > { %v1566_v8 = vsel %vm343_vm13, %v1564_v22, %v1551_v41 }
 0x1a0   : > { %v1572_v25 = vsel %vm351_vm14, %v1566_v8, 0 }
 0x1a1   : > { %1581 = vmatpush.bf16.msra.mxu0 %v1572_v25 }
 0x1a4   : > { %1729 = vmatmul.msk.bf16.vlgmr.msra.gmra.mxu0 %vm347_vm15, %v1728_v17 }
 0x1b3   : > { %v1595_v24 = vpop.permute.xlu0 %1594  ;;  %v1602_v7 = vpop.permute.xlu1 %1601 }
 0x1c4   : > { %v510_v12 = vpop.f32.mrf.mxu1 }
 0x1c5   : > { %v515_v50 = vadd.f32 %v510_v12, %v363_v10 }
 0x1cc   : > { %v512_v16 = vpop.f32.mrf.mxu1 }
 0x1d2   : > { %v655_v36 = vpop.f32.mrf.mxu2 }
 0x1d3   : > { %v660_v52 = vadd.f32 %v655_v36, %v515_v50 }
 0x1d5   : > { %v848_v55 = vadd.f32 %v843_v45, %v660_v52 }
 0x1d8   : > { %v988_v44 = vpop.f32.mrf.mxu0 }
 0x1d9   : > { %v993_v26 = vadd.f32 %v988_v44, %v848_v55 }
 0x1da   : > { %v657_v48 = vpop.f32.mrf.mxu2 }
 0x1e0   : > { %v990_v53 = vpop.f32.mrf.mxu0 }
 0x1f0   : > { %v1293_v43 = vpop.f32.mrf.mxu2 }
 0x1f8   : > { %v1295_v23 = vpop.f32.mrf.mxu2 }
 0x208   : > { %v1438_v35 = vpop.f32.mrf.mxu3 }
 0x210   : > { %v1133_v28 = vpop.f32.mrf.mxu1  ;;  %v1440_v54 = vpop.f32.mrf.mxu3 }
 0x211   : > { %v1138_v46 = vadd.f32 %v1133_v28, %v993_v26 }
 0x213   : > { %v1298_v0 = vadd.f32 %v1293_v43, %v1138_v46 }
 0x215   : > { %v1443_v2 = vadd.f32 %v1438_v35, %v1298_v0 }
 0x218   : > { %v1135_v63 = vpop.f32.mrf.mxu1 }
 0x221   : > { %v1583_v60 = vpop.f32.mrf.mxu0 }
 0x222   : > { %v1588_v61 = vadd.f32 %v1583_v60, %v1443_v2 }
 0x224   : > { %v1597_v5 = vmul.f32 %v1595_v24, %v1588_v61 }
 0x226   : > { %v1604_v57 = vadd.f32 %v1602_v7, %v1597_v5 }
 0x228   : > { %v1605_v39 = vmax.f32 %v1604_v57, 0.0 }
 0x229   : > { %v1585_v6 = vpop.f32.mrf.mxu0 }
 0x22a   : > { %v1606_v13 = vpack.c.bf16 %v1605_v39, %v1605_v39 }
 0x22c   : > { %1607 = vst [vmem:[%s204_s27] sm:$0xf] %v1606_v13 }
 0x22d   : > { %1848 = shalt.err (!%p1845_p6)
}
 0x22e   : > { %1736 = dma.vmem_to_hbm [thread:$0]  (%p2005_p3), %s1624_s30, 64, %s1626_s19, %s1609_s18  }
 0x22f PF: > { %p1742_p7 = scmp.ge.s32.totalorder %s1915_s22, 2  ;;  %s1637_s10 = sand.u32 1, %s1887_s15  }
 0x230   : > { %s1638_s14 = scalar_lea.sflag [#allocation4], %s1637_s10 }
 0x231   : > { %p1739_p9 = pnand %p1742_p7, %p2014_p8 }
 0x233   : > { %p1740_p10 = pneg %p1739_p9 }
 0x235   : > { %1882 = dma.done.wait (%p1740_p10), %s1638_s14, 64  }
 0x236   : > { %1884 = vsyncadd (%p1740_p10), %s1638_s14, 4294967232  ;;  %s17_s22 = sadd.s32 1, %s1915_s22   ;;  %s2737_s15 = smov %s1891_s16 }
 0x237   : > { %p14_p11 = scmp.ge.s32.totalorder %s17_s22, 6   ;;  %s2738_s16 = smov %s1895_s17 }
 0x238   : > { %s2739_s17 = smov %s2023_s7  ;;  %s2740_s18 = smov %s1907_s20 }
 0x239   : > { %s2741_s19 = smov %s1911_s21  ;;  %s2742_s20 = smov %s2745_s25 }
 0x23a   : > { %s2743_s21 = smov %s2749_s26  ;;  %16 = sbr.rel (!%p14_p11) target bundleno = 5 (0x5), region = 80 }
 0x23f   :  { %1644 = vsyncpa [#allocation4], 1 }
 0x240   :  { %1646 = vsyncpa [#allocation4 + $0x1], 1 }

</bundles_post_ra>
